<compile_context>
chip_gen: v6e
topology: v6e:2x2x1
jax: 0.10.0
libtpu: 0.0.40
codegen_flags: <defaults>
</compile_context>

<pallas_src>
import functools

import jax
import jax.numpy as jnp
from jax import lax
from jax.experimental import pallas as pl
from jax.experimental.pallas import tpu as pltpu


def _vmem():
    return pl.BlockSpec(memory_space=pltpu.MemorySpace.VMEM)


# ---------------------------------------------------------------------------
# Fused kernel
# ---------------------------------------------------------------------------
def make_fused_kernel(B, T, Bp, vocab, E, Lc, Dc, Cc, ngram_list, H, C):
    BT = B * T
    TBp = T * Bp
    H2, H4, H8, H16 = 2 * H, 4 * H, 8 * H, 16 * H

    def kernel(word_ref, char_ref, srow_ref, m2h_ref, amask_ref,
               embed_ref, wconv_ref, wih_ref, bias_ref, whh_ref,
               w1_ref, b1_ref, w2_ref, b2_ref, wout_ref, bout_ref,
               pred_ref, lstm_ref):
        f32 = jnp.float32

        # (1) Embedding lookup as a one-hot MXU matmul (no HBM gather).
        wid = word_ref[...]                                              # (BT, 1) int32
        onehot = (lax.broadcasted_iota(jnp.int32, (BT, vocab), 1) == wid).astype(f32)
        embed_bt = jnp.dot(onehot, embed_ref[...], preferred_element_type=f32)   # (BT, E)

        # (2) Char n-gram convs: ONE matmul against shifted zero-padded weights.
        conv_all = jnp.dot(char_ref[...], wconv_ref[...], preferred_element_type=f32)
        pooled = []
        base = 0
        for n in ngram_list:
            L = Lc - n + 1
            best = conv_all[:, base:base + Cc]
            for p in range(1, L):                 # adaptive_max_pool1d(1) over positions
                best = jnp.maximum(best, conv_all[:, base + p * Cc: base + (p + 1) * Cc])
            pooled.append(best)
            base += L * Cc
        char_bt = jnp.concatenate(pooled, axis=1)                        # (BT, n_ngrams*Cc)

        feats_bt = jnp.concatenate([char_bt, embed_bt], axis=1)          # (BT, Din)
        # TODO(synk): nn.Dropout() treated as identity (eval-mode inference).

        # (3) Sort + time-major + pad-to-Bp rearrangement as one selection matmul.
        srow = srow_ref[...]                                             # (TBp, 1) int32, -1 = pad
        sel = (lax.broadcasted_iota(jnp.int32, (TBp, BT), 1) == srow).astype(f32)
        x_tm = jnp.dot(sel, feats_bt, preferred_element_type=f32)        # (TBp, Din)

        # (4) Input projection for BOTH directions & all timesteps: one matmul.
        #     Column layout (per 8H half): [i(2H) | f(2H) | g(2H) | o(2H)], 2H = [fwd | bwd].
        proj = jnp.dot(x_tm, wih_ref[...], preferred_element_type=f32) + bias_ref[...]  # (TBp,16H)
        proj_f = proj[:, 0:H8]          # fwd weights + full combined bias (bwd cols zero)
        proj_b = proj[:, H8:H16]        # bwd weights (fwd cols zero)

        whh = whh_ref[...]              # (2H, 8H) block-structured recurrent weights
        m2h = m2h_ref[...]              # (TBp, 2H): fwd mask(t) | bwd mask(T-1-t)

        # (5) Fused bidirectional recurrence, fully unrolled (T small & static).
        h = jnp.zeros((Bp, H2), f32)    # packed state [h_fwd | h_bwd]
        c = jnp.zeros((Bp, H2), f32)
        for t in range(T):
            tb = T - 1 - t
            g_pre = proj_f[t * Bp:(t + 1) * Bp, :] + proj_b[tb * Bp:(tb + 1) * Bp, :]
            gates = g_pre + jnp.dot(h, whh, preferred_element_type=f32)  # (Bp, 8H)
            s_if = jax.nn.sigmoid(gates[:, 0:H4])                        # [i | f], aligned (Bp,4H)
            g_g = jnp.tanh(gates[:, H4:H4 + H2])
            o_g = jax.nn.sigmoid(gates[:, H4 + H2:H8])
            i_g = s_if[:, 0:H2]
            f_g = s_if[:, H2:H4]
            c_new = f_g * c + i_g * g_g
            h_new = o_g * jnp.tanh(c_new)
            m = m2h[t * Bp:(t + 1) * Bp, :]                              # (Bp, 2H)
            hm = m * h_new                                               # zero output past length
            c = m * c_new + (1.0 - m) * c                                # freeze state past length
            h = hm + (1.0 - m) * h
            lstm_ref[t * Bp:(t + 1) * Bp, 0:H] = hm[:, 0:H]              # fwd @ true time t
            lstm_ref[tb * Bp:(tb + 1) * Bp, H:H2] = hm[:, H:H2]          # bwd @ true time T-1-t

        # (6) Attention MLP on the whole (TBp, 2H) slab + masked softmax over time
        #     + weighted pooling as ONE selection matmul (op count independent of T).
        Y = lstm_ref[...]                                                # (TBp, 2H)
        hid = jnp.tanh(jnp.dot(Y, w1_ref[...], preferred_element_type=f32) + b1_ref[...])
        a = jnp.sum(hid * w2_ref[...], axis=1, keepdims=True) + b2_ref[...]      # (TBp, 1)

        am = amask_ref[...]                                              # ORIGINAL-length quirk mask
        a_msk = jnp.where(am > 0.5, a, -1e30)
        gmx = jnp.max(a_msk, keepdims=True)                              # shared stabiliser (1,1)
        e = jnp.where(am > 0.5, jnp.exp(a_msk - gmx), 0.0)               # (TBp, 1)

        lane = lax.broadcasted_iota(jnp.int32, (Bp, TBp), 1)
        sub = lax.broadcasted_iota(jnp.int32, (Bp, TBp), 0)
        pool = (lane % Bp == sub).astype(f32)                            # (Bp, TBp) time-group sum
        z_ext = jnp.concatenate([e * Y, e], axis=1)                      # (TBp, 2H+1)
        agg = jnp.dot(pool, z_ext, preferred_element_type=f32)           # (Bp, 2H+1)
        acc = agg[:, 0:H2]
        ssum = agg[:, H2:H2 + 1]
        weighted = acc / jnp.maximum(ssum, 1e-30)                        # zero for empty sequences

        # (7) Output layer + argmax (softmax dropped: argmax(softmax(x)) == argmax(x)).
        scores = jnp.dot(weighted, wout_ref[...], preferred_element_type=f32) + bout_ref[...]
        idx = lax.broadcasted_iota(jnp.int32, scores.shape, 1)
        smax = jnp.max(scores, axis=1, keepdims=True)
        cand = jnp.where(scores >= smax, idx, C)                         # first-max tie-break
        pred_ref[...] = jnp.min(cand, axis=1, keepdims=True).astype(jnp.int32)

    return kernel


def fused_forward_call(word_col, char_x, src_row, mask2h, amask, params,
                       B, T, Bp, vocab, E, Lc, Dc, Cc, ngram_list, H, C):
    kernel = make_fused_kernel(B, T, Bp, vocab, E, Lc, Dc, Cc, ngram_list, H, C)
    return pl.pallas_call(
        kernel,
        out_shape=jax.ShapeDtypeStruct((Bp, 1), jnp.int32),
        in_specs=[_vmem()] * 16,
        out_specs=_vmem(),
        scratch_shapes=[pltpu.VMEM((T * Bp, 2 * H), jnp.float32)],
    )(word_col, char_x, src_row, mask2h, amask,
      params['embed'], params['wconv_big'], params['wih_big'], params['bias_big'],
      params['whh_r'], params['attn_w1_t'], params['attn_b1'], params['attn_w2_row'],
      params['attn_b2'], params['out_w_t'], params['out_b'])


# ---------------------------------------------------------------------------
# Parameter init (deterministic, synthetic) with fused / reordered weights
# ---------------------------------------------------------------------------
def init_params(key, vocab, E, min_n, max_n, Dc, Cc, H, n_tags, Lc):
    ks = jax.random.split(key, 32)
    ki = iter(range(32))
    p = {}
    p['embed'] = 0.2 * jax.random.normal(ks[next(ki)], (vocab, E), jnp.float32)

    # Char convs: fold im2col into position-shifted zero-padded weight columns.
    ngram_list = list(range(min_n, max_n + 1))
    conv_cols = sum(Lc - n + 1 for n in ngram_list) * Cc
    wconv = jnp.zeros((Lc * Dc, conv_cols), jnp.float32)
    base = 0
    for n in ngram_list:
        w_n = 0.2 * jax.random.normal(ks[next(ki)], (Cc, 1, n * Dc), jnp.float32)  # Conv1d layout
        w_nt = w_n[:, 0, :].T                                           # (n*Dc, Cc)
        L = Lc - n + 1
        for pos in range(L):
            wconv = wconv.at[pos * Dc:(pos + n) * Dc,
                             base + pos * Cc: base + (pos + 1) * Cc].set(w_nt)
        base += L * Cc
    p['wconv_big'] = wconv

    nCc = len(ngram_list) * Cc
    Din = nCc + E
    H2, H4, H8, H16 = 2 * H, 4 * H, 8 * H, 16 * H

    # BiLSTM weights, fused & reordered to [i(2H) f(2H) g(2H) o(2H)], 2H = [fwd | bwd].
    wih_big = jnp.zeros((Din, H16), jnp.float32)   # [fwd-only cols | bwd-only cols]
    bias_big = jnp.zeros((1, H16), jnp.float32)    # combined bias lives in the first 8H half
    whh_r = jnp.zeros((H2, H8), jnp.float32)       # block-structured recurrent weights
    for d in range(2):                             # 0 = fwd, 1 = bwd
        wih = 0.2 * jax.random.normal(ks[next(ki)], (H4, Din), jnp.float32)   # gate order i,f,g,o
        whh = 0.2 * jax.random.normal(ks[next(ki)], (H4, H), jnp.float32)
        bih = 0.1 * jax.random.normal(ks[next(ki)], (H4,), jnp.float32)
        bhh = 0.1 * jax.random.normal(ks[next(ki)], (H4,), jnp.float32)
        b = bih + bhh
        for q in range(4):                         # gate q in (i, f, g, o)
            col = q * H2 + d * H
            wih_big = wih_big.at[:, d * H8 + col: d * H8 + col + H].set(wih[q * H:(q + 1) * H, :].T)
            bias_big = bias_big.at[:, col: col + H].set(b[q * H:(q + 1) * H][None, :])
            whh_r = whh_r.at[d * H:(d + 1) * H, col: col + H].set(whh[q * H:(q + 1) * H, :].T)
    p['wih_big'] = wih_big
    p['bias_big'] = bias_big
    p['whh_r'] = whh_r

    # AttentionLayer: Linear(2H -> H), Linear(H -> 1)
    w1 = 0.2 * jax.random.normal(ks[next(ki)], (H, H2), jnp.float32)
    b1 = 0.1 * jax.random.normal(ks[next(ki)], (H,), jnp.float32)
    w2 = 0.2 * jax.random.normal(ks[next(ki)], (1, H), jnp.float32)
    b2 = 0.1 * jax.random.normal(ks[next(ki)], (1,), jnp.float32)
    p['attn_w1_t'] = w1.T
    p['attn_b1'] = b1.reshape(1, H)
    p['attn_w2_row'] = w2
    p['attn_b2'] = b2.reshape(1, 1)

    # OutputLayer: Linear(2H -> n_tags)
    wout = 0.2 * jax.random.normal(ks[next(ki)], (n_tags, H2), jnp.float32)
    bout = 0.1 * jax.random.normal(ks[next(ki)], (n_tags,), jnp.float32)
    p['out_w_t'] = wout.T
    p['out_b'] = bout.reshape(1, n_tags)
    return p


# ---------------------------------------------------------------------------
# Forward wrapper: only tiny scalar/int/mask prep in plain JAX, ONE pallas_call.
# ---------------------------------------------------------------------------
def forward(params, word_ids, char_feats, lengths,
            B, T, Bp, min_n, max_n, Dc, Lc, Cc, H, n_tags, vocab, E):
    ngram_list = list(range(min_n, max_n + 1))

    # Sort by length descending (reference semantics; forward never un-sorts).
    sorted_index = jnp.argsort(-lengths)
    sorted_length = lengths[sorted_index]

    slen_p = jnp.zeros((Bp,), lengths.dtype).at[:B].set(sorted_length)
    olen_p = jnp.zeros((Bp,), lengths.dtype).at[:B].set(lengths)   # ORIGINAL lengths (reference quirk)
    sidx_p = jnp.zeros((Bp,), jnp.int32).at[:B].set(sorted_index.astype(jnp.int32))

    t_idx = jnp.arange(T, dtype=jnp.int32)
    p_idx = jnp.arange(Bp, dtype=jnp.int32)

    # Row-source indices for the in-kernel [sort + time-major + pad] selection matmul.
    src = jnp.where(p_idx[None, :] < B, sidx_p[None, :] * T + t_idx[:, None], -1)   # (T, Bp)
    src_row = src.reshape(T * Bp, 1).astype(jnp.int32)

    # Combined LSTM gate mask: fwd half keyed by t, bwd half keyed by (T-1-t), sorted lengths.
    mf = (t_idx[:, None] < slen_p[None, :]).astype(jnp.float32)
    mb = ((T - 1 - t_idx)[:, None] < slen_p[None, :]).astype(jnp.float32)
    mask2h = jnp.concatenate(
        [jnp.broadcast_to(mf[..., None], (T, Bp, H)),
         jnp.broadcast_to(mb[..., None], (T, Bp, H))], axis=-1).reshape(T * Bp, 2 * H)

    # Attention mask: ORIGINAL (unsorted) lengths against sorted rows -- quirk reproduced.
    amask = (t_idx[:, None] < olen_p[None, :]).astype(jnp.float32).reshape(T * Bp, 1)

    word_col = word_ids.reshape(B * T, 1).astype(jnp.int32)
    char_x = char_feats[:, 0, :]                                   # (B*T, Lc*Dc)

    pred = fused_forward_call(word_col, char_x, src_row, mask2h, amask, params,
                              B, T, Bp, vocab, E, Lc, Dc, Cc, ngram_list, H, n_tags)
    return pred[:B, 0]        # predIndex, in sorted-by-length order (as in the reference forward)


if __name__ == "__main__":
    key = jax.random.PRNGKey(0)
    B, T = 2, 8                 # batchSize, maxLength
    vocab, E = 20, 16           # vocabularySize, embedDimension
    min_n, max_n = 1, 3         # minNgrams, maxNgrams
    Dc, Cc = 8, 8               # charInputDim, charOutDim
    H = 32                      # hiddenDim
    n_tags = 5                  # tagVocabSize (!= 2 -> predIndex path)
    Lc = 6                      # chars per word (conv input length = Lc*Dc)
    Bp = 8                      # batch padded to one sublane tile

    k_param, k_words, k_chars = jax.random.split(key, 3)
    params = init_params(k_param, vocab, E, min_n, max_n, Dc, Cc, H, n_tags, Lc)

    word_ids = jax.random.randint(k_words, (B, T), 0, vocab, dtype=jnp.int32)
    char_feats = jax.random.normal(k_chars, (B * T, 1, Lc * Dc), jnp.float32)
    lengths = jnp.array([5, 8], dtype=jnp.int32)   # max length == T (required by the reference .view)

    run = jax.jit(functools.partial(forward, B=B, T=T, Bp=Bp, min_n=min_n, max_n=max_n,
                                    Dc=Dc, Lc=Lc, Cc=Cc, H=H, n_tags=n_tags,
                                    vocab=vocab, E=E))
    pred_index = run(params, word_ids, char_feats, lengths)
    jax.block_until_ready(pred_index)
    print("KERNEL_OK")
</pallas_src>

<mosaic_0001>
module attributes {stable_mosaic.version = 11 : i64} {
  func.func @kernel(%arg0: memref<16x1xi32, #tpu.memory_space<vmem>>, %arg1: memref<16x48xf32, #tpu.memory_space<vmem>>, %arg2: memref<64x1xi32, #tpu.memory_space<vmem>>, %arg3: memref<64x64xf32, #tpu.memory_space<vmem>>, %arg4: memref<64x1xf32, #tpu.memory_space<vmem>>, %arg5: memref<20x16xf32, #tpu.memory_space<vmem>>, %arg6: memref<48x120xf32, #tpu.memory_space<vmem>>, %arg7: memref<40x512xf32, #tpu.memory_space<vmem>>, %arg8: memref<1x512xf32, #tpu.memory_space<vmem>>, %arg9: memref<64x256xf32, #tpu.memory_space<vmem>>, %arg10: memref<64x32xf32, #tpu.memory_space<vmem>>, %arg11: memref<1x32xf32, #tpu.memory_space<vmem>>, %arg12: memref<1x32xf32, #tpu.memory_space<vmem>>, %arg13: memref<1x1xf32, #tpu.memory_space<vmem>>, %arg14: memref<64x5xf32, #tpu.memory_space<vmem>>, %arg15: memref<1x5xf32, #tpu.memory_space<vmem>>, %arg16: memref<8x1xi32, #tpu.memory_space<vmem>>, %arg17: memref<64x64xf32, #tpu.memory_space<vmem>>) attributes {dimension_semantics = [], scalar_prefetch = 0 : i64, scratch_operands = 1 : i64, tpu.core_type = #tpu.core_type<tc>} {
    %c0 = arith.constant 0 : index
    %c0_0 = arith.constant 0 : index
    %0 = vector.load %arg0[%c0, %c0_0] : memref<16x1xi32, #tpu.memory_space<vmem>>, vector<16x1xi32>
    %1 = tpu.iota {dimensions = array<i32: 1>} : vector<16x20xi32>
    %2 = vector.broadcast %0 : vector<16x1xi32> to vector<16x20xi32>
    %3 = arith.cmpi eq, %1, %2 : vector<16x20xi32>
    %4 = arith.extui %3 : vector<16x20xi1> to vector<16x20xi32>
    %5 = arith.sitofp %4 : vector<16x20xi32> to vector<16x20xf32>
    %c0_1 = arith.constant 0 : index
    %c0_2 = arith.constant 0 : index
    %6 = vector.load %arg5[%c0_1, %c0_2] : memref<20x16xf32, #tpu.memory_space<vmem>>, vector<20x16xf32>
    %cst = arith.constant dense<0.000000e+00> : vector<16x16xf32>
    %7 = tpu.matmul %5, %6, %cst {dimension_numbers = #tpu.dot_dimension_numbers<[1], [0], [0], [1], [0, 0, 1, 1], [], []>} : vector<16x20xf32>, vector<20x16xf32>, vector<16x16xf32> -> vector<16x16xf32>
    %c0_3 = arith.constant 0 : index
    %c0_4 = arith.constant 0 : index
    %8 = vector.load %arg1[%c0_3, %c0_4] : memref<16x48xf32, #tpu.memory_space<vmem>>, vector<16x48xf32>
    %c0_5 = arith.constant 0 : index
    %c0_6 = arith.constant 0 : index
    %9 = vector.load %arg6[%c0_5, %c0_6] : memref<48x120xf32, #tpu.memory_space<vmem>>, vector<48x120xf32>
    %cst_7 = arith.constant dense<0.000000e+00> : vector<16x120xf32>
    %10 = tpu.matmul %8, %9, %cst_7 {dimension_numbers = #tpu.dot_dimension_numbers<[1], [0], [0], [1], [0, 0, 1, 1], [], []>} : vector<16x48xf32>, vector<48x120xf32>, vector<16x120xf32> -> vector<16x120xf32>
    %11 = vector.extract_strided_slice %10 {offsets = [0, 0], sizes = [16, 8], strides = [1, 1]} : vector<16x120xf32> to vector<16x8xf32>
    %12 = vector.extract_strided_slice %10 {offsets = [0, 8], sizes = [16, 8], strides = [1, 1]} : vector<16x120xf32> to vector<16x8xf32>
    %13 = arith.maximumf %11, %12 : vector<16x8xf32>
    %14 = vector.extract_strided_slice %10 {offsets = [0, 16], sizes = [16, 8], strides = [1, 1]} : vector<16x120xf32> to vector<16x8xf32>
    %15 = arith.maximumf %13, %14 : vector<16x8xf32>
    %16 = vector.extract_strided_slice %10 {offsets = [0, 24], sizes = [16, 8], strides = [1, 1]} : vector<16x120xf32> to vector<16x8xf32>
    %17 = arith.maximumf %15, %16 : vector<16x8xf32>
    %18 = vector.extract_strided_slice %10 {offsets = [0, 32], sizes = [16, 8], strides = [1, 1]} : vector<16x120xf32> to vector<16x8xf32>
    %19 = arith.maximumf %17, %18 : vector<16x8xf32>
    %20 = vector.extract_strided_slice %10 {offsets = [0, 40], sizes = [16, 8], strides = [1, 1]} : vector<16x120xf32> to vector<16x8xf32>
    %21 = arith.maximumf %19, %20 : vector<16x8xf32>
    %22 = vector.extract_strided_slice %10 {offsets = [0, 48], sizes = [16, 8], strides = [1, 1]} : vector<16x120xf32> to vector<16x8xf32>
    %23 = vector.extract_strided_slice %10 {offsets = [0, 56], sizes = [16, 8], strides = [1, 1]} : vector<16x120xf32> to vector<16x8xf32>
    %24 = arith.maximumf %22, %23 : vector<16x8xf32>
    %25 = vector.extract_strided_slice %10 {offsets = [0, 64], sizes = [16, 8], strides = [1, 1]} : vector<16x120xf32> to vector<16x8xf32>
    %26 = arith.maximumf %24, %25 : vector<16x8xf32>
    %27 = vector.extract_strided_slice %10 {offsets = [0, 72], sizes = [16, 8], strides = [1, 1]} : vector<16x120xf32> to vector<16x8xf32>
    %28 = arith.maximumf %26, %27 : vector<16x8xf32>
    %29 = vector.extract_strided_slice %10 {offsets = [0, 80], sizes = [16, 8], strides = [1, 1]} : vector<16x120xf32> to vector<16x8xf32>
    %30 = arith.maximumf %28, %29 : vector<16x8xf32>
    %31 = vector.extract_strided_slice %10 {offsets = [0, 88], sizes = [16, 8], strides = [1, 1]} : vector<16x120xf32> to vector<16x8xf32>
    %32 = vector.extract_strided_slice %10 {offsets = [0, 96], sizes = [16, 8], strides = [1, 1]} : vector<16x120xf32> to vector<16x8xf32>
    %33 = arith.maximumf %31, %32 : vector<16x8xf32>
    %34 = vector.extract_strided_slice %10 {offsets = [0, 104], sizes = [16, 8], strides = [1, 1]} : vector<16x120xf32> to vector<16x8xf32>
    %35 = arith.maximumf %33, %34 : vector<16x8xf32>
    %36 = vector.extract_strided_slice %10 {offsets = [0, 112], sizes = [16, 8], strides = [1, 1]} : vector<16x120xf32> to vector<16x8xf32>
    %37 = arith.maximumf %35, %36 : vector<16x8xf32>
    %38 = tpu.concatenate %21, %30, %37 in 1 : vector<16x8xf32>, vector<16x8xf32>, vector<16x8xf32> -> vector<16x24xf32>
    %39 = tpu.concatenate %38, %7 in 1 : vector<16x24xf32>, vector<16x16xf32> -> vector<16x40xf32>
    %c0_8 = arith.constant 0 : index
    %c0_9 = arith.constant 0 : index
    %40 = vector.load %arg2[%c0_8, %c0_9] : memref<64x1xi32, #tpu.memory_space<vmem>>, vector<64x1xi32>
    %41 = tpu.iota {dimensions = array<i32: 1>} : vector<64x16xi32>
    %42 = vector.broadcast %40 : vector<64x1xi32> to vector<64x16xi32>
    %43 = arith.cmpi eq, %41, %42 : vector<64x16xi32>
    %44 = arith.extui %43 : vector<64x16xi1> to vector<64x16xi32>
    %45 = arith.sitofp %44 : vector<64x16xi32> to vector<64x16xf32>
    %cst_10 = arith.constant dense<0.000000e+00> : vector<64x40xf32>
    %46 = tpu.matmul %45, %39, %cst_10 {dimension_numbers = #tpu.dot_dimension_numbers<[1], [0], [0], [1], [0, 0, 1, 1], [], []>} : vector<64x16xf32>, vector<16x40xf32>, vector<64x40xf32> -> vector<64x40xf32>
    %c0_11 = arith.constant 0 : index
    %c0_12 = arith.constant 0 : index
    %47 = vector.load %arg7[%c0_11, %c0_12] : memref<40x512xf32, #tpu.memory_space<vmem>>, vector<40x512xf32>
    %cst_13 = arith.constant dense<0.000000e+00> : vector<64x512xf32>
    %48 = tpu.matmul %46, %47, %cst_13 {dimension_numbers = #tpu.dot_dimension_numbers<[1], [0], [0], [1], [0, 0, 1, 1], [], []>} : vector<64x40xf32>, vector<40x512xf32>, vector<64x512xf32> -> vector<64x512xf32>
    %c0_14 = arith.constant 0 : index
    %c0_15 = arith.constant 0 : index
    %49 = vector.load %arg8[%c0_14, %c0_15] : memref<1x512xf32, #tpu.memory_space<vmem>>, vector<1x512xf32>
    %50 = vector.broadcast %49 : vector<1x512xf32> to vector<64x512xf32>
    %51 = arith.addf %48, %50 : vector<64x512xf32>
    %52 = vector.extract_strided_slice %51 {offsets = [0, 0], sizes = [64, 256], strides = [1, 1]} : vector<64x512xf32> to vector<64x256xf32>
    %53 = vector.extract_strided_slice %51 {offsets = [0, 256], sizes = [64, 256], strides = [1, 1]} : vector<64x512xf32> to vector<64x256xf32>
    %c0_16 = arith.constant 0 : index
    %c0_17 = arith.constant 0 : index
    %54 = vector.load %arg9[%c0_16, %c0_17] : memref<64x256xf32, #tpu.memory_space<vmem>>, vector<64x256xf32>
    %c0_18 = arith.constant 0 : index
    %c0_19 = arith.constant 0 : index
    %55 = vector.load %arg3[%c0_18, %c0_19] : memref<64x64xf32, #tpu.memory_space<vmem>>, vector<64x64xf32>
    %cst_20 = arith.constant 0.000000e+00 : f32
    %56 = vector.broadcast %cst_20 : f32 to vector<8x64xf32>
    %cst_21 = arith.constant 0.000000e+00 : f32
    %57 = vector.broadcast %cst_21 : f32 to vector<8x64xf32>
    %58 = vector.extract_strided_slice %52 {offsets = [0, 0], sizes = [8, 256], strides = [1, 1]} : vector<64x256xf32> to vector<8x256xf32>
    %59 = vector.extract_strided_slice %53 {offsets = [56, 0], sizes = [8, 256], strides = [1, 1]} : vector<64x256xf32> to vector<8x256xf32>
    %60 = arith.addf %58, %59 : vector<8x256xf32>
    %cst_22 = arith.constant dense<0.000000e+00> : vector<8x256xf32>
    %61 = tpu.matmul %56, %54, %cst_22 {dimension_numbers = #tpu.dot_dimension_numbers<[1], [0], [0], [1], [0, 0, 1, 1], [], []>} : vector<8x64xf32>, vector<64x256xf32>, vector<8x256xf32> -> vector<8x256xf32>
    %62 = arith.addf %60, %61 : vector<8x256xf32>
    %63 = vector.extract_strided_slice %62 {offsets = [0, 0], sizes = [8, 128], strides = [1, 1]} : vector<8x256xf32> to vector<8x128xf32>
    %64 = arith.negf %63 : vector<8x128xf32>
    %65 = math.exp %64 : vector<8x128xf32>
    %cst_23 = arith.constant 1.000000e+00 : f32
    %66 = vector.broadcast %cst_23 : f32 to vector<8x128xf32>
    %67 = arith.addf %66, %65 : vector<8x128xf32>
    %68 = arith.divf %66, %67 : vector<8x128xf32>
    %69 = vector.extract_strided_slice %62 {offsets = [0, 128], sizes = [8, 64], strides = [1, 1]} : vector<8x256xf32> to vector<8x64xf32>
    %70 = math.tanh %69 : vector<8x64xf32>
    %71 = vector.extract_strided_slice %62 {offsets = [0, 192], sizes = [8, 64], strides = [1, 1]} : vector<8x256xf32> to vector<8x64xf32>
    %72 = arith.negf %71 : vector<8x64xf32>
    %73 = math.exp %72 : vector<8x64xf32>
    %cst_24 = arith.constant 1.000000e+00 : f32
    %74 = vector.broadcast %cst_24 : f32 to vector<8x64xf32>
    %75 = arith.addf %74, %73 : vector<8x64xf32>
    %76 = arith.divf %74, %75 : vector<8x64xf32>
    %77 = vector.extract_strided_slice %68 {offsets = [0, 0], sizes = [8, 64], strides = [1, 1]} : vector<8x128xf32> to vector<8x64xf32>
    %78 = vector.extract_strided_slice %68 {offsets = [0, 64], sizes = [8, 64], strides = [1, 1]} : vector<8x128xf32> to vector<8x64xf32>
    %79 = arith.mulf %78, %57 : vector<8x64xf32>
    %80 = arith.mulf %77, %70 : vector<8x64xf32>
    %81 = arith.addf %79, %80 : vector<8x64xf32>
    %82 = math.tanh %81 : vector<8x64xf32>
    %83 = arith.mulf %76, %82 : vector<8x64xf32>
    %84 = vector.extract_strided_slice %55 {offsets = [0, 0], sizes = [8, 64], strides = [1, 1]} : vector<64x64xf32> to vector<8x64xf32>
    %85 = arith.mulf %84, %83 : vector<8x64xf32>
    %86 = arith.mulf %84, %81 : vector<8x64xf32>
    %cst_25 = arith.constant 1.000000e+00 : f32
    %87 = vector.broadcast %cst_25 : f32 to vector<8x64xf32>
    %88 = arith.subf %87, %84 : vector<8x64xf32>
    %89 = arith.mulf %88, %57 : vector<8x64xf32>
    %90 = arith.addf %86, %89 : vector<8x64xf32>
    %cst_26 = arith.constant 1.000000e+00 : f32
    %91 = vector.broadcast %cst_26 : f32 to vector<8x64xf32>
    %92 = arith.subf %91, %84 : vector<8x64xf32>
    %93 = arith.mulf %92, %56 : vector<8x64xf32>
    %94 = arith.addf %85, %93 : vector<8x64xf32>
    %95 = vector.extract_strided_slice %85 {offsets = [0, 0], sizes = [8, 32], strides = [1, 1]} : vector<8x64xf32> to vector<8x32xf32>
    %c0_27 = arith.constant 0 : index
    %c0_28 = arith.constant 0 : index
    %96 = vector.load %arg17[%c0_27, %c0_28] : memref<64x64xf32, #tpu.memory_space<vmem>>, vector<8x32xf32>
    tpu.vector_store %arg17[%c0_27, %c0_28], %95 {strides = array<i32>} : memref<64x64xf32, #tpu.memory_space<vmem>>, vector<8x32xf32>,
    %97 = vector.extract_strided_slice %85 {offsets = [0, 32], sizes = [8, 32], strides = [1, 1]} : vector<8x64xf32> to vector<8x32xf32>
    %c56 = arith.constant 56 : index
    %c32 = arith.constant 32 : index
    %98 = vector.load %arg17[%c56, %c32] : memref<64x64xf32, #tpu.memory_space<vmem>>, vector<8x32xf32>
    tpu.vector_store %arg17[%c56, %c32], %97 {strides = array<i32>} : memref<64x64xf32, #tpu.memory_space<vmem>>, vector<8x32xf32>,
    %99 = vector.extract_strided_slice %52 {offsets = [8, 0], sizes = [8, 256], strides = [1, 1]} : vector<64x256xf32> to vector<8x256xf32>
    %100 = vector.extract_strided_slice %53 {offsets = [48, 0], sizes = [8, 256], strides = [1, 1]} : vector<64x256xf32> to vector<8x256xf32>
    %101 = arith.addf %99, %100 : vector<8x256xf32>
    %cst_29 = arith.constant dense<0.000000e+00> : vector<8x256xf32>
    %102 = tpu.matmul %94, %54, %cst_29 {dimension_numbers = #tpu.dot_dimension_numbers<[1], [0], [0], [1], [0, 0, 1, 1], [], []>} : vector<8x64xf32>, vector<64x256xf32>, vector<8x256xf32> -> vector<8x256xf32>
    %103 = arith.addf %101, %102 : vector<8x256xf32>
    %104 = vector.extract_strided_slice %103 {offsets = [0, 0], sizes = [8, 128], strides = [1, 1]} : vector<8x256xf32> to vector<8x128xf32>
    %105 = arith.negf %104 : vector<8x128xf32>
    %106 = math.exp %105 : vector<8x128xf32>
    %cst_30 = arith.constant 1.000000e+00 : f32
    %107 = vector.broadcast %cst_30 : f32 to vector<8x128xf32>
    %108 = arith.addf %107, %106 : vector<8x128xf32>
    %109 = arith.divf %107, %108 : vector<8x128xf32>
    %110 = vector.extract_strided_slice %103 {offsets = [0, 128], sizes = [8, 64], strides = [1, 1]} : vector<8x256xf32> to vector<8x64xf32>
    %111 = math.tanh %110 : vector<8x64xf32>
    %112 = vector.extract_strided_slice %103 {offsets = [0, 192], sizes = [8, 64], strides = [1, 1]} : vector<8x256xf32> to vector<8x64xf32>
    %113 = arith.negf %112 : vector<8x64xf32>
    %114 = math.exp %113 : vector<8x64xf32>
    %cst_31 = arith.constant 1.000000e+00 : f32
    %115 = vector.broadcast %cst_31 : f32 to vector<8x64xf32>
    %116 = arith.addf %115, %114 : vector<8x64xf32>
    %117 = arith.divf %115, %116 : vector<8x64xf32>
    %118 = vector.extract_strided_slice %109 {offsets = [0, 0], sizes = [8, 64], strides = [1, 1]} : vector<8x128xf32> to vector<8x64xf32>
    %119 = vector.extract_strided_slice %109 {offsets = [0, 64], sizes = [8, 64], strides = [1, 1]} : vector<8x128xf32> to vector<8x64xf32>
    %120 = arith.mulf %119, %90 : vector<8x64xf32>
    %121 = arith.mulf %118, %111 : vector<8x64xf32>
    %122 = arith.addf %120, %121 : vector<8x64xf32>
    %123 = math.tanh %122 : vector<8x64xf32>
    %124 = arith.mulf %117, %123 : vector<8x64xf32>
    %125 = vector.extract_strided_slice %55 {offsets = [8, 0], sizes = [8, 64], strides = [1, 1]} : vector<64x64xf32> to vector<8x64xf32>
    %126 = arith.mulf %125, %124 : vector<8x64xf32>
    %127 = arith.mulf %125, %122 : vector<8x64xf32>
    %cst_32 = arith.constant 1.000000e+00 : f32
    %128 = vector.broadcast %cst_32 : f32 to vector<8x64xf32>
    %129 = arith.subf %128, %125 : vector<8x64xf32>
    %130 = arith.mulf %129, %90 : vector<8x64xf32>
    %131 = arith.addf %127, %130 : vector<8x64xf32>
    %cst_33 = arith.constant 1.000000e+00 : f32
    %132 = vector.broadcast %cst_33 : f32 to vector<8x64xf32>
    %133 = arith.subf %132, %125 : vector<8x64xf32>
    %134 = arith.mulf %133, %94 : vector<8x64xf32>
    %135 = arith.addf %126, %134 : vector<8x64xf32>
    %136 = vector.extract_strided_slice %126 {offsets = [0, 0], sizes = [8, 32], strides = [1, 1]} : vector<8x64xf32> to vector<8x32xf32>
    %c8 = arith.constant 8 : index
    %c0_34 = arith.constant 0 : index
    %137 = vector.load %arg17[%c8, %c0_34] : memref<64x64xf32, #tpu.memory_space<vmem>>, vector<8x32xf32>
    tpu.vector_store %arg17[%c8, %c0_34], %136 {strides = array<i32>} : memref<64x64xf32, #tpu.memory_space<vmem>>, vector<8x32xf32>,
    %138 = vector.extract_strided_slice %126 {offsets = [0, 32], sizes = [8, 32], strides = [1, 1]} : vector<8x64xf32> to vector<8x32xf32>
    %c48 = arith.constant 48 : index
    %c32_35 = arith.constant 32 : index
    %139 = vector.load %arg17[%c48, %c32_35] : memref<64x64xf32, #tpu.memory_space<vmem>>, vector<8x32xf32>
    tpu.vector_store %arg17[%c48, %c32_35], %138 {strides = array<i32>} : memref<64x64xf32, #tpu.memory_space<vmem>>, vector<8x32xf32>,
    %140 = vector.extract_strided_slice %52 {offsets = [16, 0], sizes = [8, 256], strides = [1, 1]} : vector<64x256xf32> to vector<8x256xf32>
    %141 = vector.extract_strided_slice %53 {offsets = [40, 0], sizes = [8, 256], strides = [1, 1]} : vector<64x256xf32> to vector<8x256xf32>
    %142 = arith.addf %140, %141 : vector<8x256xf32>
    %cst_36 = arith.constant dense<0.000000e+00> : vector<8x256xf32>
    %143 = tpu.matmul %135, %54, %cst_36 {dimension_numbers = #tpu.dot_dimension_numbers<[1], [0], [0], [1], [0, 0, 1, 1], [], []>} : vector<8x64xf32>, vector<64x256xf32>, vector<8x256xf32> -> vector<8x256xf32>
    %144 = arith.addf %142, %143 : vector<8x256xf32>
    %145 = vector.extract_strided_slice %144 {offsets = [0, 0], sizes = [8, 128], strides = [1, 1]} : vector<8x256xf32> to vector<8x128xf32>
    %146 = arith.negf %145 : vector<8x128xf32>
    %147 = math.exp %146 : vector<8x128xf32>
    %cst_37 = arith.constant 1.000000e+00 : f32
    %148 = vector.broadcast %cst_37 : f32 to vector<8x128xf32>
    %149 = arith.addf %148, %147 : vector<8x128xf32>
    %150 = arith.divf %148, %149 : vector<8x128xf32>
    %151 = vector.extract_strided_slice %144 {offsets = [0, 128], sizes = [8, 64], strides = [1, 1]} : vector<8x256xf32> to vector<8x64xf32>
    %152 = math.tanh %151 : vector<8x64xf32>
    %153 = vector.extract_strided_slice %144 {offsets = [0, 192], sizes = [8, 64], strides = [1, 1]} : vector<8x256xf32> to vector<8x64xf32>
    %154 = arith.negf %153 : vector<8x64xf32>
    %155 = math.exp %154 : vector<8x64xf32>
    %cst_38 = arith.constant 1.000000e+00 : f32
    %156 = vector.broadcast %cst_38 : f32 to vector<8x64xf32>
    %157 = arith.addf %156, %155 : vector<8x64xf32>
    %158 = arith.divf %156, %157 : vector<8x64xf32>
    %159 = vector.extract_strided_slice %150 {offsets = [0, 0], sizes = [8, 64], strides = [1, 1]} : vector<8x128xf32> to vector<8x64xf32>
    %160 = vector.extract_strided_slice %150 {offsets = [0, 64], sizes = [8, 64], strides = [1, 1]} : vector<8x128xf32> to vector<8x64xf32>
    %161 = arith.mulf %160, %131 : vector<8x64xf32>
    %162 = arith.mulf %159, %152 : vector<8x64xf32>
    %163 = arith.addf %161, %162 : vector<8x64xf32>
    %164 = math.tanh %163 : vector<8x64xf32>
    %165 = arith.mulf %158, %164 : vector<8x64xf32>
    %166 = vector.extract_strided_slice %55 {offsets = [16, 0], sizes = [8, 64], strides = [1, 1]} : vector<64x64xf32> to vector<8x64xf32>
    %167 = arith.mulf %166, %165 : vector<8x64xf32>
    %168 = arith.mulf %166, %163 : vector<8x64xf32>
    %cst_39 = arith.constant 1.000000e+00 : f32
    %169 = vector.broadcast %cst_39 : f32 to vector<8x64xf32>
    %170 = arith.subf %169, %166 : vector<8x64xf32>
    %171 = arith.mulf %170, %131 : vector<8x64xf32>
    %172 = arith.addf %168, %171 : vector<8x64xf32>
    %cst_40 = arith.constant 1.000000e+00 : f32
    %173 = vector.broadcast %cst_40 : f32 to vector<8x64xf32>
    %174 = arith.subf %173, %166 : vector<8x64xf32>
    %175 = arith.mulf %174, %135 : vector<8x64xf32>
    %176 = arith.addf %167, %175 : vector<8x64xf32>
    %177 = vector.extract_strided_slice %167 {offsets = [0, 0], sizes = [8, 32], strides = [1, 1]} : vector<8x64xf32> to vector<8x32xf32>
    %c16 = arith.constant 16 : index
    %c0_41 = arith.constant 0 : index
    %178 = vector.load %arg17[%c16, %c0_41] : memref<64x64xf32, #tpu.memory_space<vmem>>, vector<8x32xf32>
    tpu.vector_store %arg17[%c16, %c0_41], %177 {strides = array<i32>} : memref<64x64xf32, #tpu.memory_space<vmem>>, vector<8x32xf32>,
    %179 = vector.extract_strided_slice %167 {offsets = [0, 32], sizes = [8, 32], strides = [1, 1]} : vector<8x64xf32> to vector<8x32xf32>
    %c40 = arith.constant 40 : index
    %c32_42 = arith.constant 32 : index
    %180 = vector.load %arg17[%c40, %c32_42] : memref<64x64xf32, #tpu.memory_space<vmem>>, vector<8x32xf32>
    tpu.vector_store %arg17[%c40, %c32_42], %179 {strides = array<i32>} : memref<64x64xf32, #tpu.memory_space<vmem>>, vector<8x32xf32>,
    %181 = vector.extract_strided_slice %52 {offsets = [24, 0], sizes = [8, 256], strides = [1, 1]} : vector<64x256xf32> to vector<8x256xf32>
    %182 = vector.extract_strided_slice %53 {offsets = [32, 0], sizes = [8, 256], strides = [1, 1]} : vector<64x256xf32> to vector<8x256xf32>
    %183 = arith.addf %181, %182 : vector<8x256xf32>
    %cst_43 = arith.constant dense<0.000000e+00> : vector<8x256xf32>
    %184 = tpu.matmul %176, %54, %cst_43 {dimension_numbers = #tpu.dot_dimension_numbers<[1], [0], [0], [1], [0, 0, 1, 1], [], []>} : vector<8x64xf32>, vector<64x256xf32>, vector<8x256xf32> -> vector<8x256xf32>
    %185 = arith.addf %183, %184 : vector<8x256xf32>
    %186 = vector.extract_strided_slice %185 {offsets = [0, 0], sizes = [8, 128], strides = [1, 1]} : vector<8x256xf32> to vector<8x128xf32>
    %187 = arith.negf %186 : vector<8x128xf32>
    %188 = math.exp %187 : vector<8x128xf32>
    %cst_44 = arith.constant 1.000000e+00 : f32
    %189 = vector.broadcast %cst_44 : f32 to vector<8x128xf32>
    %190 = arith.addf %189, %188 : vector<8x128xf32>
    %191 = arith.divf %189, %190 : vector<8x128xf32>
    %192 = vector.extract_strided_slice %185 {offsets = [0, 128], sizes = [8, 64], strides = [1, 1]} : vector<8x256xf32> to vector<8x64xf32>
    %193 = math.tanh %192 : vector<8x64xf32>
    %194 = vector.extract_strided_slice %185 {offsets = [0, 192], sizes = [8, 64], strides = [1, 1]} : vector<8x256xf32> to vector<8x64xf32>
    %195 = arith.negf %194 : vector<8x64xf32>
    %196 = math.exp %195 : vector<8x64xf32>
    %cst_45 = arith.constant 1.000000e+00 : f32
    %197 = vector.broadcast %cst_45 : f32 to vector<8x64xf32>
    %198 = arith.addf %197, %196 : vector<8x64xf32>
    %199 = arith.divf %197, %198 : vector<8x64xf32>
    %200 = vector.extract_strided_slice %191 {offsets = [0, 0], sizes = [8, 64], strides = [1, 1]} : vector<8x128xf32> to vector<8x64xf32>
    %201 = vector.extract_strided_slice %191 {offsets = [0, 64], sizes = [8, 64], strides = [1, 1]} : vector<8x128xf32> to vector<8x64xf32>
    %202 = arith.mulf %201, %172 : vector<8x64xf32>
    %203 = arith.mulf %200, %193 : vector<8x64xf32>
    %204 = arith.addf %202, %203 : vector<8x64xf32>
    %205 = math.tanh %204 : vector<8x64xf32>
    %206 = arith.mulf %199, %205 : vector<8x64xf32>
    %207 = vector.extract_strided_slice %55 {offsets = [24, 0], sizes = [8, 64], strides = [1, 1]} : vector<64x64xf32> to vector<8x64xf32>
    %208 = arith.mulf %207, %206 : vector<8x64xf32>
    %209 = arith.mulf %207, %204 : vector<8x64xf32>
    %cst_46 = arith.constant 1.000000e+00 : f32
    %210 = vector.broadcast %cst_46 : f32 to vector<8x64xf32>
    %211 = arith.subf %210, %207 : vector<8x64xf32>
    %212 = arith.mulf %211, %172 : vector<8x64xf32>
    %213 = arith.addf %209, %212 : vector<8x64xf32>
    %cst_47 = arith.constant 1.000000e+00 : f32
    %214 = vector.broadcast %cst_47 : f32 to vector<8x64xf32>
    %215 = arith.subf %214, %207 : vector<8x64xf32>
    %216 = arith.mulf %215, %176 : vector<8x64xf32>
    %217 = arith.addf %208, %216 : vector<8x64xf32>
    %218 = vector.extract_strided_slice %208 {offsets = [0, 0], sizes = [8, 32], strides = [1, 1]} : vector<8x64xf32> to vector<8x32xf32>
    %c24 = arith.constant 24 : index
    %c0_48 = arith.constant 0 : index
    %219 = vector.load %arg17[%c24, %c0_48] : memref<64x64xf32, #tpu.memory_space<vmem>>, vector<8x32xf32>
    tpu.vector_store %arg17[%c24, %c0_48], %218 {strides = array<i32>} : memref<64x64xf32, #tpu.memory_space<vmem>>, vector<8x32xf32>,
    %220 = vector.extract_strided_slice %208 {offsets = [0, 32], sizes = [8, 32], strides = [1, 1]} : vector<8x64xf32> to vector<8x32xf32>
    %c32_49 = arith.constant 32 : index
    %c32_50 = arith.constant 32 : index
    %221 = vector.load %arg17[%c32_49, %c32_50] : memref<64x64xf32, #tpu.memory_space<vmem>>, vector<8x32xf32>
    tpu.vector_store %arg17[%c32_49, %c32_50], %220 {strides = array<i32>} : memref<64x64xf32, #tpu.memory_space<vmem>>, vector<8x32xf32>,
    %222 = vector.extract_strided_slice %52 {offsets = [32, 0], sizes = [8, 256], strides = [1, 1]} : vector<64x256xf32> to vector<8x256xf32>
    %223 = vector.extract_strided_slice %53 {offsets = [24, 0], sizes = [8, 256], strides = [1, 1]} : vector<64x256xf32> to vector<8x256xf32>
    %224 = arith.addf %222, %223 : vector<8x256xf32>
    %cst_51 = arith.constant dense<0.000000e+00> : vector<8x256xf32>
    %225 = tpu.matmul %217, %54, %cst_51 {dimension_numbers = #tpu.dot_dimension_numbers<[1], [0], [0], [1], [0, 0, 1, 1], [], []>} : vector<8x64xf32>, vector<64x256xf32>, vector<8x256xf32> -> vector<8x256xf32>
    %226 = arith.addf %224, %225 : vector<8x256xf32>
    %227 = vector.extract_strided_slice %226 {offsets = [0, 0], sizes = [8, 128], strides = [1, 1]} : vector<8x256xf32> to vector<8x128xf32>
    %228 = arith.negf %227 : vector<8x128xf32>
    %229 = math.exp %228 : vector<8x128xf32>
    %cst_52 = arith.constant 1.000000e+00 : f32
    %230 = vector.broadcast %cst_52 : f32 to vector<8x128xf32>
    %231 = arith.addf %230, %229 : vector<8x128xf32>
    %232 = arith.divf %230, %231 : vector<8x128xf32>
    %233 = vector.extract_strided_slice %226 {offsets = [0, 128], sizes = [8, 64], strides = [1, 1]} : vector<8x256xf32> to vector<8x64xf32>
    %234 = math.tanh %233 : vector<8x64xf32>
    %235 = vector.extract_strided_slice %226 {offsets = [0, 192], sizes = [8, 64], strides = [1, 1]} : vector<8x256xf32> to vector<8x64xf32>
    %236 = arith.negf %235 : vector<8x64xf32>
    %237 = math.exp %236 : vector<8x64xf32>
    %cst_53 = arith.constant 1.000000e+00 : f32
    %238 = vector.broadcast %cst_53 : f32 to vector<8x64xf32>
    %239 = arith.addf %238, %237 : vector<8x64xf32>
    %240 = arith.divf %238, %239 : vector<8x64xf32>
    %241 = vector.extract_strided_slice %232 {offsets = [0, 0], sizes = [8, 64], strides = [1, 1]} : vector<8x128xf32> to vector<8x64xf32>
    %242 = vector.extract_strided_slice %232 {offsets = [0, 64], sizes = [8, 64], strides = [1, 1]} : vector<8x128xf32> to vector<8x64xf32>
    %243 = arith.mulf %242, %213 : vector<8x64xf32>
    %244 = arith.mulf %241, %234 : vector<8x64xf32>
    %245 = arith.addf %243, %244 : vector<8x64xf32>
    %246 = math.tanh %245 : vector<8x64xf32>
    %247 = arith.mulf %240, %246 : vector<8x64xf32>
    %248 = vector.extract_strided_slice %55 {offsets = [32, 0], sizes = [8, 64], strides = [1, 1]} : vector<64x64xf32> to vector<8x64xf32>
    %249 = arith.mulf %248, %247 : vector<8x64xf32>
    %250 = arith.mulf %248, %245 : vector<8x64xf32>
    %cst_54 = arith.constant 1.000000e+00 : f32
    %251 = vector.broadcast %cst_54 : f32 to vector<8x64xf32>
    %252 = arith.subf %251, %248 : vector<8x64xf32>
    %253 = arith.mulf %252, %213 : vector<8x64xf32>
    %254 = arith.addf %250, %253 : vector<8x64xf32>
    %cst_55 = arith.constant 1.000000e+00 : f32
    %255 = vector.broadcast %cst_55 : f32 to vector<8x64xf32>
    %256 = arith.subf %255, %248 : vector<8x64xf32>
    %257 = arith.mulf %256, %217 : vector<8x64xf32>
    %258 = arith.addf %249, %257 : vector<8x64xf32>
    %259 = vector.extract_strided_slice %249 {offsets = [0, 0], sizes = [8, 32], strides = [1, 1]} : vector<8x64xf32> to vector<8x32xf32>
    %c32_56 = arith.constant 32 : index
    %c0_57 = arith.constant 0 : index
    %260 = vector.load %arg17[%c32_56, %c0_57] : memref<64x64xf32, #tpu.memory_space<vmem>>, vector<8x32xf32>
    tpu.vector_store %arg17[%c32_56, %c0_57], %259 {strides = array<i32>} : memref<64x64xf32, #tpu.memory_space<vmem>>, vector<8x32xf32>,
    %261 = vector.extract_strided_slice %249 {offsets = [0, 32], sizes = [8, 32], strides = [1, 1]} : vector<8x64xf32> to vector<8x32xf32>
    %c24_58 = arith.constant 24 : index
    %c32_59 = arith.constant 32 : index
    %262 = vector.load %arg17[%c24_58, %c32_59] : memref<64x64xf32, #tpu.memory_space<vmem>>, vector<8x32xf32>
    tpu.vector_store %arg17[%c24_58, %c32_59], %261 {strides = array<i32>} : memref<64x64xf32, #tpu.memory_space<vmem>>, vector<8x32xf32>,
    %263 = vector.extract_strided_slice %52 {offsets = [40, 0], sizes = [8, 256], strides = [1, 1]} : vector<64x256xf32> to vector<8x256xf32>
    %264 = vector.extract_strided_slice %53 {offsets = [16, 0], sizes = [8, 256], strides = [1, 1]} : vector<64x256xf32> to vector<8x256xf32>
    %265 = arith.addf %263, %264 : vector<8x256xf32>
    %cst_60 = arith.constant dense<0.000000e+00> : vector<8x256xf32>
    %266 = tpu.matmul %258, %54, %cst_60 {dimension_numbers = #tpu.dot_dimension_numbers<[1], [0], [0], [1], [0, 0, 1, 1], [], []>} : vector<8x64xf32>, vector<64x256xf32>, vector<8x256xf32> -> vector<8x256xf32>
    %267 = arith.addf %265, %266 : vector<8x256xf32>
    %268 = vector.extract_strided_slice %267 {offsets = [0, 0], sizes = [8, 128], strides = [1, 1]} : vector<8x256xf32> to vector<8x128xf32>
    %269 = arith.negf %268 : vector<8x128xf32>
    %270 = math.exp %269 : vector<8x128xf32>
    %cst_61 = arith.constant 1.000000e+00 : f32
    %271 = vector.broadcast %cst_61 : f32 to vector<8x128xf32>
    %272 = arith.addf %271, %270 : vector<8x128xf32>
    %273 = arith.divf %271, %272 : vector<8x128xf32>
    %274 = vector.extract_strided_slice %267 {offsets = [0, 128], sizes = [8, 64], strides = [1, 1]} : vector<8x256xf32> to vector<8x64xf32>
    %275 = math.tanh %274 : vector<8x64xf32>
    %276 = vector.extract_strided_slice %267 {offsets = [0, 192], sizes = [8, 64], strides = [1, 1]} : vector<8x256xf32> to vector<8x64xf32>
    %277 = arith.negf %276 : vector<8x64xf32>
    %278 = math.exp %277 : vector<8x64xf32>
    %cst_62 = arith.constant 1.000000e+00 : f32
    %279 = vector.broadcast %cst_62 : f32 to vector<8x64xf32>
    %280 = arith.addf %279, %278 : vector<8x64xf32>
    %281 = arith.divf %279, %280 : vector<8x64xf32>
    %282 = vector.extract_strided_slice %273 {offsets = [0, 0], sizes = [8, 64], strides = [1, 1]} : vector<8x128xf32> to vector<8x64xf32>
    %283 = vector.extract_strided_slice %273 {offsets = [0, 64], sizes = [8, 64], strides = [1, 1]} : vector<8x128xf32> to vector<8x64xf32>
    %284 = arith.mulf %283, %254 : vector<8x64xf32>
    %285 = arith.mulf %282, %275 : vector<8x64xf32>
    %286 = arith.addf %284, %285 : vector<8x64xf32>
    %287 = math.tanh %286 : vector<8x64xf32>
    %288 = arith.mulf %281, %287 : vector<8x64xf32>
    %289 = vector.extract_strided_slice %55 {offsets = [40, 0], sizes = [8, 64], strides = [1, 1]} : vector<64x64xf32> to vector<8x64xf32>
    %290 = arith.mulf %289, %288 : vector<8x64xf32>
    %291 = arith.mulf %289, %286 : vector<8x64xf32>
    %cst_63 = arith.constant 1.000000e+00 : f32
    %292 = vector.broadcast %cst_63 : f32 to vector<8x64xf32>
    %293 = arith.subf %292, %289 : vector<8x64xf32>
    %294 = arith.mulf %293, %254 : vector<8x64xf32>
    %295 = arith.addf %291, %294 : vector<8x64xf32>
    %cst_64 = arith.constant 1.000000e+00 : f32
    %296 = vector.broadcast %cst_64 : f32 to vector<8x64xf32>
    %297 = arith.subf %296, %289 : vector<8x64xf32>
    %298 = arith.mulf %297, %258 : vector<8x64xf32>
    %299 = arith.addf %290, %298 : vector<8x64xf32>
    %300 = vector.extract_strided_slice %290 {offsets = [0, 0], sizes = [8, 32], strides = [1, 1]} : vector<8x64xf32> to vector<8x32xf32>
    %c40_65 = arith.constant 40 : index
    %c0_66 = arith.constant 0 : index
    %301 = vector.load %arg17[%c40_65, %c0_66] : memref<64x64xf32, #tpu.memory_space<vmem>>, vector<8x32xf32>
    tpu.vector_store %arg17[%c40_65, %c0_66], %300 {strides = array<i32>} : memref<64x64xf32, #tpu.memory_space<vmem>>, vector<8x32xf32>,
    %302 = vector.extract_strided_slice %290 {offsets = [0, 32], sizes = [8, 32], strides = [1, 1]} : vector<8x64xf32> to vector<8x32xf32>
    %c16_67 = arith.constant 16 : index
    %c32_68 = arith.constant 32 : index
    %303 = vector.load %arg17[%c16_67, %c32_68] : memref<64x64xf32, #tpu.memory_space<vmem>>, vector<8x32xf32>
    tpu.vector_store %arg17[%c16_67, %c32_68], %302 {strides = array<i32>} : memref<64x64xf32, #tpu.memory_space<vmem>>, vector<8x32xf32>,
    %304 = vector.extract_strided_slice %52 {offsets = [48, 0], sizes = [8, 256], strides = [1, 1]} : vector<64x256xf32> to vector<8x256xf32>
    %305 = vector.extract_strided_slice %53 {offsets = [8, 0], sizes = [8, 256], strides = [1, 1]} : vector<64x256xf32> to vector<8x256xf32>
    %306 = arith.addf %304, %305 : vector<8x256xf32>
    %cst_69 = arith.constant dense<0.000000e+00> : vector<8x256xf32>
    %307 = tpu.matmul %299, %54, %cst_69 {dimension_numbers = #tpu.dot_dimension_numbers<[1], [0], [0], [1], [0, 0, 1, 1], [], []>} : vector<8x64xf32>, vector<64x256xf32>, vector<8x256xf32> -> vector<8x256xf32>
    %308 = arith.addf %306, %307 : vector<8x256xf32>
    %309 = vector.extract_strided_slice %308 {offsets = [0, 0], sizes = [8, 128], strides = [1, 1]} : vector<8x256xf32> to vector<8x128xf32>
    %310 = arith.negf %309 : vector<8x128xf32>
    %311 = math.exp %310 : vector<8x128xf32>
    %cst_70 = arith.constant 1.000000e+00 : f32
    %312 = vector.broadcast %cst_70 : f32 to vector<8x128xf32>
    %313 = arith.addf %312, %311 : vector<8x128xf32>
    %314 = arith.divf %312, %313 : vector<8x128xf32>
    %315 = vector.extract_strided_slice %308 {offsets = [0, 128], sizes = [8, 64], strides = [1, 1]} : vector<8x256xf32> to vector<8x64xf32>
    %316 = math.tanh %315 : vector<8x64xf32>
    %317 = vector.extract_strided_slice %308 {offsets = [0, 192], sizes = [8, 64], strides = [1, 1]} : vector<8x256xf32> to vector<8x64xf32>
    %318 = arith.negf %317 : vector<8x64xf32>
    %319 = math.exp %318 : vector<8x64xf32>
    %cst_71 = arith.constant 1.000000e+00 : f32
    %320 = vector.broadcast %cst_71 : f32 to vector<8x64xf32>
    %321 = arith.addf %320, %319 : vector<8x64xf32>
    %322 = arith.divf %320, %321 : vector<8x64xf32>
    %323 = vector.extract_strided_slice %314 {offsets = [0, 0], sizes = [8, 64], strides = [1, 1]} : vector<8x128xf32> to vector<8x64xf32>
    %324 = vector.extract_strided_slice %314 {offsets = [0, 64], sizes = [8, 64], strides = [1, 1]} : vector<8x128xf32> to vector<8x64xf32>
    %325 = arith.mulf %324, %295 : vector<8x64xf32>
    %326 = arith.mulf %323, %316 : vector<8x64xf32>
    %327 = arith.addf %325, %326 : vector<8x64xf32>
    %328 = math.tanh %327 : vector<8x64xf32>
    %329 = arith.mulf %322, %328 : vector<8x64xf32>
    %330 = vector.extract_strided_slice %55 {offsets = [48, 0], sizes = [8, 64], strides = [1, 1]} : vector<64x64xf32> to vector<8x64xf32>
    %331 = arith.mulf %330, %329 : vector<8x64xf32>
    %332 = arith.mulf %330, %327 : vector<8x64xf32>
    %cst_72 = arith.constant 1.000000e+00 : f32
    %333 = vector.broadcast %cst_72 : f32 to vector<8x64xf32>
    %334 = arith.subf %333, %330 : vector<8x64xf32>
    %335 = arith.mulf %334, %295 : vector<8x64xf32>
    %336 = arith.addf %332, %335 : vector<8x64xf32>
    %cst_73 = arith.constant 1.000000e+00 : f32
    %337 = vector.broadcast %cst_73 : f32 to vector<8x64xf32>
    %338 = arith.subf %337, %330 : vector<8x64xf32>
    %339 = arith.mulf %338, %299 : vector<8x64xf32>
    %340 = arith.addf %331, %339 : vector<8x64xf32>
    %341 = vector.extract_strided_slice %331 {offsets = [0, 0], sizes = [8, 32], strides = [1, 1]} : vector<8x64xf32> to vector<8x32xf32>
    %c48_74 = arith.constant 48 : index
    %c0_75 = arith.constant 0 : index
    %342 = vector.load %arg17[%c48_74, %c0_75] : memref<64x64xf32, #tpu.memory_space<vmem>>, vector<8x32xf32>
    tpu.vector_store %arg17[%c48_74, %c0_75], %341 {strides = array<i32>} : memref<64x64xf32, #tpu.memory_space<vmem>>, vector<8x32xf32>,
    %343 = vector.extract_strided_slice %331 {offsets = [0, 32], sizes = [8, 32], strides = [1, 1]} : vector<8x64xf32> to vector<8x32xf32>
    %c8_76 = arith.constant 8 : index
    %c32_77 = arith.constant 32 : index
    %344 = vector.load %arg17[%c8_76, %c32_77] : memref<64x64xf32, #tpu.memory_space<vmem>>, vector<8x32xf32>
    tpu.vector_store %arg17[%c8_76, %c32_77], %343 {strides = array<i32>} : memref<64x64xf32, #tpu.memory_space<vmem>>, vector<8x32xf32>,
    %345 = vector.extract_strided_slice %52 {offsets = [56, 0], sizes = [8, 256], strides = [1, 1]} : vector<64x256xf32> to vector<8x256xf32>
    %346 = vector.extract_strided_slice %53 {offsets = [0, 0], sizes = [8, 256], strides = [1, 1]} : vector<64x256xf32> to vector<8x256xf32>
    %347 = arith.addf %345, %346 : vector<8x256xf32>
    %cst_78 = arith.constant dense<0.000000e+00> : vector<8x256xf32>
    %348 = tpu.matmul %340, %54, %cst_78 {dimension_numbers = #tpu.dot_dimension_numbers<[1], [0], [0], [1], [0, 0, 1, 1], [], []>} : vector<8x64xf32>, vector<64x256xf32>, vector<8x256xf32> -> vector<8x256xf32>
    %349 = arith.addf %347, %348 : vector<8x256xf32>
    %350 = vector.extract_strided_slice %349 {offsets = [0, 0], sizes = [8, 128], strides = [1, 1]} : vector<8x256xf32> to vector<8x128xf32>
    %351 = arith.negf %350 : vector<8x128xf32>
    %352 = math.exp %351 : vector<8x128xf32>
    %cst_79 = arith.constant 1.000000e+00 : f32
    %353 = vector.broadcast %cst_79 : f32 to vector<8x128xf32>
    %354 = arith.addf %353, %352 : vector<8x128xf32>
    %355 = arith.divf %353, %354 : vector<8x128xf32>
    %356 = vector.extract_strided_slice %349 {offsets = [0, 128], sizes = [8, 64], strides = [1, 1]} : vector<8x256xf32> to vector<8x64xf32>
    %357 = math.tanh %356 : vector<8x64xf32>
    %358 = vector.extract_strided_slice %349 {offsets = [0, 192], sizes = [8, 64], strides = [1, 1]} : vector<8x256xf32> to vector<8x64xf32>
    %359 = arith.negf %358 : vector<8x64xf32>
    %360 = math.exp %359 : vector<8x64xf32>
    %cst_80 = arith.constant 1.000000e+00 : f32
    %361 = vector.broadcast %cst_80 : f32 to vector<8x64xf32>
    %362 = arith.addf %361, %360 : vector<8x64xf32>
    %363 = arith.divf %361, %362 : vector<8x64xf32>
    %364 = vector.extract_strided_slice %355 {offsets = [0, 0], sizes = [8, 64], strides = [1, 1]} : vector<8x128xf32> to vector<8x64xf32>
    %365 = vector.extract_strided_slice %355 {offsets = [0, 64], sizes = [8, 64], strides = [1, 1]} : vector<8x128xf32> to vector<8x64xf32>
    %366 = arith.mulf %365, %336 : vector<8x64xf32>
    %367 = arith.mulf %364, %357 : vector<8x64xf32>
    %368 = arith.addf %366, %367 : vector<8x64xf32>
    %369 = math.tanh %368 : vector<8x64xf32>
    %370 = arith.mulf %363, %369 : vector<8x64xf32>
    %371 = vector.extract_strided_slice %55 {offsets = [56, 0], sizes = [8, 64], strides = [1, 1]} : vector<64x64xf32> to vector<8x64xf32>
    %372 = arith.mulf %371, %370 : vector<8x64xf32>
    %373 = vector.extract_strided_slice %372 {offsets = [0, 0], sizes = [8, 32], strides = [1, 1]} : vector<8x64xf32> to vector<8x32xf32>
    %c56_81 = arith.constant 56 : index
    %c0_82 = arith.constant 0 : index
    %374 = vector.load %arg17[%c56_81, %c0_82] : memref<64x64xf32, #tpu.memory_space<vmem>>, vector<8x32xf32>
    tpu.vector_store %arg17[%c56_81, %c0_82], %373 {strides = array<i32>} : memref<64x64xf32, #tpu.memory_space<vmem>>, vector<8x32xf32>,
    %375 = vector.extract_strided_slice %372 {offsets = [0, 32], sizes = [8, 32], strides = [1, 1]} : vector<8x64xf32> to vector<8x32xf32>
    %c0_83 = arith.constant 0 : index
    %c32_84 = arith.constant 32 : index
    %376 = vector.load %arg17[%c0_83, %c32_84] : memref<64x64xf32, #tpu.memory_space<vmem>>, vector<8x32xf32>
    tpu.vector_store %arg17[%c0_83, %c32_84], %375 {strides = array<i32>} : memref<64x64xf32, #tpu.memory_space<vmem>>, vector<8x32xf32>,
    %c0_85 = arith.constant 0 : index
    %c0_86 = arith.constant 0 : index
    %377 = vector.load %arg17[%c0_85, %c0_86] : memref<64x64xf32, #tpu.memory_space<vmem>>, vector<64x64xf32>
    %c0_87 = arith.constant 0 : index
    %c0_88 = arith.constant 0 : index
    %378 = vector.load %arg10[%c0_87, %c0_88] : memref<64x32xf32, #tpu.memory_space<vmem>>, vector<64x32xf32>
    %cst_89 = arith.constant dense<0.000000e+00> : vector<64x32xf32>
    %379 = tpu.matmul %377, %378, %cst_89 {dimension_numbers = #tpu.dot_dimension_numbers<[1], [0], [0], [1], [0, 0, 1, 1], [], []>} : vector<64x64xf32>, vector<64x32xf32>, vector<64x32xf32> -> vector<64x32xf32>
    %c0_90 = arith.constant 0 : index
    %c0_91 = arith.constant 0 : index
    %380 = vector.load %arg11[%c0_90, %c0_91] : memref<1x32xf32, #tpu.memory_space<vmem>>, vector<1x32xf32>
    %381 = vector.broadcast %380 : vector<1x32xf32> to vector<64x32xf32>
    %382 = arith.addf %379, %381 : vector<64x32xf32>
    %383 = math.tanh %382 : vector<64x32xf32>
    %c0_92 = arith.constant 0 : index
    %c0_93 = arith.constant 0 : index
    %384 = vector.load %arg12[%c0_92, %c0_93] : memref<1x32xf32, #tpu.memory_space<vmem>>, vector<1x32xf32>
    %385 = vector.broadcast %384 : vector<1x32xf32> to vector<64x32xf32>
    %386 = arith.mulf %383, %385 : vector<64x32xf32>
    %cst_94 = arith.constant dense<0.000000e+00> : vector<64xf32>
    %387 = vector.multi_reduction <add>, %386, %cst_94 [1] : vector<64x32xf32> to vector<64xf32>
    %388 = vector.shape_cast %387 : vector<64xf32> to vector<64x1xf32>
    %c0_95 = arith.constant 0 : index
    %c0_96 = arith.constant 0 : index
    %389 = vector.load %arg13[%c0_95, %c0_96] : memref<1x1xf32, #tpu.memory_space<vmem>>, vector<1x1xf32>
    %390 = vector.broadcast %389 : vector<1x1xf32> to vector<64x1xf32>
    %391 = arith.addf %388, %390 : vector<64x1xf32>
    %c0_97 = arith.constant 0 : index
    %c0_98 = arith.constant 0 : index
    %392 = vector.load %arg4[%c0_97, %c0_98] : memref<64x1xf32, #tpu.memory_space<vmem>>, vector<64x1xf32>
    %cst_99 = arith.constant 5.000000e-01 : f32
    %393 = vector.broadcast %cst_99 : f32 to vector<64x1xf32>
    %394 = arith.cmpf ogt, %392, %393 : vector<64x1xf32>
    %cst_100 = arith.constant -1.000000e+30 : f32
    %395 = vector.broadcast %cst_100 : f32 to vector<64x1xf32>
    %396 = arith.select %394, %391, %395 : vector<64x1xi1>, vector<64x1xf32>
    %397 = vector.shape_cast %396 : vector<64x1xf32> to vector<1x64x1xf32>
    %cst_101 = arith.constant dense<0xFF800000> : vector<1xf32>
    %398 = vector.multi_reduction <maximumf>, %397, %cst_101 [1, 2] : vector<1x64x1xf32> to vector<1xf32>
    %399 = vector.shape_cast %398 : vector<1xf32> to vector<1x1x1xf32>
    %400 = vector.extract %399[0, 0, 0] : f32 from vector<1x1x1xf32>
    %401 = vector.broadcast %400 : f32 to vector<1x1xf32>
    %cst_102 = arith.constant 5.000000e-01 : f32
    %402 = vector.broadcast %cst_102 : f32 to vector<64x1xf32>
    %403 = arith.cmpf ogt, %392, %402 : vector<64x1xf32>
    %404 = vector.broadcast %401 : vector<1x1xf32> to vector<64x1xf32>
    %405 = arith.subf %396, %404 : vector<64x1xf32>
    %406 = math.exp %405 : vector<64x1xf32>
    %cst_103 = arith.constant 0.000000e+00 : f32
    %407 = vector.broadcast %cst_103 : f32 to vector<64x1xf32>
    %408 = arith.select %403, %406, %407 : vector<64x1xi1>, vector<64x1xf32>
    %409 = tpu.iota {dimensions = array<i32: 1>} : vector<8x64xi32>
    %410 = tpu.iota {dimensions = array<i32: 0>} : vector<8x64xi32>
    %c8_i32 = arith.constant 8 : i32
    %c0_i32 = arith.constant 0 : i32
    %411 = arith.cmpi eq, %c8_i32, %c0_i32 : i32
    %c1_i32 = arith.constant 1 : i32
    %412 = arith.select %411, %c1_i32, %c8_i32 : i32
    %413 = vector.broadcast %412 : i32 to vector<8x64xi32>
    %414 = arith.remsi %409, %413 : vector<8x64xi32>
    %c0_i32_104 = arith.constant 0 : i32
    %415 = vector.broadcast %c0_i32_104 : i32 to vector<8x64xi32>
    %416 = arith.cmpi ne, %414, %415 : vector<8x64xi32>
    %c0_i32_105 = arith.constant 0 : i32
    %417 = vector.broadcast %c0_i32_105 : i32 to vector<8x64xi32>
    %418 = arith.cmpi slt, %414, %417 : vector<8x64xi32>
    %c0_i32_106 = arith.constant 0 : i32
    %419 = arith.cmpi slt, %412, %c0_i32_106 : i32
    %420 = vector.broadcast %419 : i1 to vector<8x64xi1>
    %421 = vector.broadcast %420 : vector<8x64xi1> to vector<8x64xi1>
    %422 = arith.xori %418, %421 : vector<8x64xi1>
    %423 = arith.andi %422, %416 : vector<8x64xi1>
    %424 = vector.broadcast %412 : i32 to vector<8x64xi32>
    %425 = arith.addi %414, %424 : vector<8x64xi32>
    %426 = arith.select %423, %425, %414 : vector<8x64xi1>, vector<8x64xi32>
    %427 = arith.cmpi eq, %426, %410 : vector<8x64xi32>
    %428 = arith.extui %427 : vector<8x64xi1> to vector<8x64xi32>
    %429 = arith.sitofp %428 : vector<8x64xi32> to vector<8x64xf32>
    %430 = vector.broadcast %408 : vector<64x1xf32> to vector<64x64xf32>
    %431 = arith.mulf %430, %377 : vector<64x64xf32>
    %432 = tpu.concatenate %431, %408 in 1 : vector<64x64xf32>, vector<64x1xf32> -> vector<64x65xf32>
    %cst_107 = arith.constant dense<0.000000e+00> : vector<8x65xf32>
    %433 = tpu.matmul %429, %432, %cst_107 {dimension_numbers = #tpu.dot_dimension_numbers<[1], [0], [0], [1], [0, 0, 1, 1], [], []>} : vector<8x64xf32>, vector<64x65xf32>, vector<8x65xf32> -> vector<8x65xf32>
    %434 = vector.extract_strided_slice %433 {offsets = [0, 0], sizes = [8, 64], strides = [1, 1]} : vector<8x65xf32> to vector<8x64xf32>
    %435 = vector.extract_strided_slice %433 {offsets = [0, 64], sizes = [8, 1], strides = [1, 1]} : vector<8x65xf32> to vector<8x1xf32>
    %cst_108 = arith.constant 1.000000e-30 : f32
    %436 = vector.broadcast %cst_108 : f32 to vector<8x1xf32>
    %437 = arith.maximumf %435, %436 : vector<8x1xf32>
    %438 = vector.broadcast %437 : vector<8x1xf32> to vector<8x64xf32>
    %439 = arith.divf %434, %438 : vector<8x64xf32>
    %c0_109 = arith.constant 0 : index
    %c0_110 = arith.constant 0 : index
    %440 = vector.load %arg14[%c0_109, %c0_110] : memref<64x5xf32, #tpu.memory_space<vmem>>, vector<64x5xf32>
    %cst_111 = arith.constant dense<0.000000e+00> : vector<8x5xf32>
    %441 = tpu.matmul %439, %440, %cst_111 {dimension_numbers = #tpu.dot_dimension_numbers<[1], [0], [0], [1], [0, 0, 1, 1], [], []>} : vector<8x64xf32>, vector<64x5xf32>, vector<8x5xf32> -> vector<8x5xf32>
    %c0_112 = arith.constant 0 : index
    %c0_113 = arith.constant 0 : index
    %442 = vector.load %arg15[%c0_112, %c0_113] : memref<1x5xf32, #tpu.memory_space<vmem>>, vector<1x5xf32>
    %443 = vector.broadcast %442 : vector<1x5xf32> to vector<8x5xf32>
    %444 = arith.addf %441, %443 : vector<8x5xf32>
    %445 = tpu.iota {dimensions = array<i32: 1>} : vector<8x5xi32>
    %cst_114 = arith.constant dense<0xFF800000> : vector<8xf32>
    %446 = vector.multi_reduction <maximumf>, %444, %cst_114 [1] : vector<8x5xf32> to vector<8xf32>
    %447 = vector.shape_cast %446 : vector<8xf32> to vector<8x1xf32>
    %448 = vector.broadcast %447 : vector<8x1xf32> to vector<8x5xf32>
    %449 = arith.cmpf oge, %444, %448 : vector<8x5xf32>
    %c5_i32 = arith.constant 5 : i32
    %450 = vector.broadcast %c5_i32 : i32 to vector<8x5xi32>
    %451 = arith.select %449, %445, %450 : vector<8x5xi1>, vector<8x5xi32>
    %cst_115 = arith.constant dense<2147483647> : vector<8xi32>
    %452 = vector.multi_reduction <minsi>, %451, %cst_115 [1] : vector<8x5xi32> to vector<8xi32>
    %453 = vector.shape_cast %452 : vector<8xi32> to vector<8x1xi32>
    %c0_116 = arith.constant 0 : index
    %c0_117 = arith.constant 0 : index
    %454 = vector.load %arg16[%c0_116, %c0_117] : memref<8x1xi32, #tpu.memory_space<vmem>>, vector<8x1xi32>
    tpu.vector_store %arg16[%c0_116, %c0_117], %453 {strides = array<i32>} : memref<8x1xi32, #tpu.memory_space<vmem>>, vector<8x1xi32>,
    return
  }
}

</mosaic_0001>

<bundles_post_ra>
// kernel: neg.1
= control target key start
LH: loop header
LB: loop body
LE: loop exit
PB: predicated region body
PF: predicated region fallthrough
CT: control target
= control target key end

     0   :  { %s24_s0 = inlined_call_operand.vmem [shape: s32[2], index: 0, kind: input, shape index: {}]   ;;  %s25_s1 = inlined_call_operand.vmem [shape: s32[2], index: 1, kind: output, shape index: {}]  }
   0x1   :  { %v2_v0 = vld [vmem:[%s24_s0] sm:$0x1] }
   0x2   :  { %v5_v1 = vsub.s32 0, %v2_v0 }
   0x4   :  { %7 = vst [vmem:[%s25_s1] sm:$0x1] %v5_v1 }

// kernel: forward.1
= control target key start
LH: loop header
LB: loop body
LE: loop exit
PB: predicated region body
PF: predicated region fallthrough
CT: control target
= control target key end

     0   :  { %v2759_v0 = vmov 0   ;;  %vm168_vm0 = vcmask 392192   ;;  %vm81_vm1 = vcmask 1043456   ;;  %v2760_v14 = vmov 0.0   ;;  %s2764_s18 = smov 96   ;;  %s2765_s19 = smov 88   ;;  %s3690_s6 = inlined_call_operand.vmem [shape: f32[48,120], index: 6, kind: input, shape index: {}]   ;;  %s3691_s0 = inlined_call_operand.vmem [shape: s32[16,1], index: 0, kind: input, shape index: {}]   ;;  %s3692_s1 = inlined_call_operand.vmem [shape: f32[16,48], index: 1, kind: input, shape index: {}]   ;;  %s3693_s5 = inlined_call_operand.vmem [shape: f32[20,16], index: 5, kind: input, shape index: {}]   ;;  %s3694_s2 = inlined_call_operand.vmem [shape: s32[64,1], index: 2, kind: input, shape index: {}]   ;;  %s3695_s7 = inlined_call_operand.vmem [shape: f32[40,512], index: 7, kind: input, shape index: {}]   ;;  %s3696_s9 = inlined_call_operand.vmem [shape: f32[64,256], index: 9, kind: input, shape index: {}]   ;;  %s3697_s8 = inlined_call_operand.vmem [shape: f32[1,512], index: 8, kind: input, shape index: {}]   ;;  %s3698_s3 = inlined_call_operand.vmem [shape: f32[64,64], index: 3, kind: input, shape index: {}]   ;;  %s3699_s10 = inlined_call_operand.vmem [shape: f32[64,32], index: 10, kind: input, shape index: {}]   ;;  %s3700_s13 = inlined_call_operand.<no memory space> [shape: f32[1,1], index: 13, kind: input, shape index: {}]   ;;  %s3701_s11 = inlined_call_operand.vmem [shape: f32[1,32], index: 11, kind: input, shape index: {}]   ;;  %s3702_s12 = inlined_call_operand.vmem [shape: f32[1,32], index: 12, kind: input, shape index: {}]   ;;  %s3703_s4 = inlined_call_operand.vmem [shape: f32[64,1], index: 4, kind: input, shape index: {}]   ;;  %s3704_s14 = inlined_call_operand.vmem [shape: f32[64,5], index: 14, kind: input, shape index: {}]   ;;  %s3705_s15 = inlined_call_operand.vmem [shape: f32[1,5], index: 15, kind: input, shape index: {}]   ;;  %s3706_s16 = inlined_call_operand.vmem [shape: s32[8,1], index: 16, kind: output, shape index: {}]  }
   0x1   :  { %3708 = sst [smem:[#allocation4_spill]] %s3690_s6  ;;  %2625 = vset.pattern.permute.xlu0 %v2759_v0  ;;  %v55_v2 = vld [vmem:[%s3691_s0] sm:$0xff]  ;;  %2626 = vset.pattern.permute.xlu1 %v2759_v0  ;;  %v56_v5 = vld [vmem:[%s3691_s0 + $0x8] sm:$0xff]  ;;  %v73_v7 = vld [vmem:[%s3693_s5 + $0x10] sm:$0xf]  ;;  %v57_v15 = vlaneseq  ;;  %vm74_vm2 = vcmask 162816  }
   0x2   :  { %s3709_s23 = sld [smem:[#allocation4_spill]]  ;;  %60 = vperm.xlu0 %2625, %v55_v2   ;;  %v160_v6 = vld [vmem:[%s3692_s1] sm:$0xff]  ;;  %2505 = vmatprep.subr.msk.mxu0 %vm81_vm1, %v73_v7  ;;  %v72_v9 = vld [vmem:[%s3693_s5 + $0x8] sm:$0xff]  ;;  %s2766_s0 = smov 24   ;;  %v328_v43 = vld [vmem:[%s3694_s2 + $0x18] sm:$0xff]  ;;  %vm311_vm5 = vcmask 130048  }
   0x3   :  { %2526 = vmatprep.mubr.msk.f32.mxu1 %vm168_vm0, %v160_v6  ;;  %2506 = vmatpush3.msk.msra.mxu0 %vm81_vm1, %v73_v7  ;;  %v71_v11 = vld [vmem:[%s3693_s5] sm:$0xff]  ;;  %v161_v13 = vld [vmem:[%s3692_s1 + $0x8] sm:$0xff]  ;;  %v2901_v16 = vand.u32 127, %v57_v15  ;;  %s2761_s1 = smov 120   ;;  %s2762_s5 = smov 112   ;;  %v327_v45 = vld [vmem:[%s3694_s2 + $0x10] sm:$0xff] }
   0x4   :  { %2507 = vmatprep.subr.mxu0 %v72_v9  ;;  %v326_v23 = vld [vmem:[%s3694_s2 + $0x8] sm:$0xff]  ;;  %v325_v24 = vld [vmem:[%s3694_s2] sm:$0xff]  ;;  %s2767_s25 = smov 56   ;;  %v332_v46 = vld [vmem:[%s3694_s2 + $0x38] sm:$0xff]  ;;  %vm308_vm7 = vcmask 64512   ;;  %vm322_vm8 = vcmask 195584  }
   0x5   :  { %2508 = vmatpush3.msra.mxu0 %v72_v9  ;;  %v330_v44 = vld [vmem:[%s3694_s2 + $0x28] sm:$0xff]  ;;  %v329_v47 = vld [vmem:[%s3694_s2 + $0x20] sm:$0xff]  ;;  %v331_v50 = vld [vmem:[%s3694_s2 + $0x30] sm:$0xff]  ;;  %vm942_vm1 = vcmask 261120  }
   0x6   :  { %63 = vperm.xlu0 %2625, %v56_v5   ;;  %2509 = vmatprep.subr.mxu0 %v71_v11  ;;  %v527_v51 = vld [vmem:[%s3695_s7 + $0x88] sm:$0xff]  ;;  %v526_v52 = vld [vmem:[%s3695_s7 + $0x80] sm:$0xff] }
   0x7   :  { %2510 = vmatpush3.msra.mxu0 %v71_v11  ;;  %v523_v53 = vld [vmem:[%s3695_s7 + $0x68] sm:$0xff]  ;;  %v522_v54 = vld [vmem:[%s3695_s7 + $0x60] sm:$0xff]  ;;  %v529_v11 = vld [vmem:[%s3695_s7 + $0x98] sm:$0xff] }
   0x8   :  { %v167_v1 = vld [vmem:[%s3709_s23 + $0x28] sm:$0xff]  ;;  %v166_v3 = vld [vmem:[%s3709_s23 + $0x20] sm:$0xff]  ;;  %v165_v4 = vld [vmem:[%s3709_s23 + $0x18] sm:$0xff] }
   0x9   :  { %2514 = vmatprep.subr.mxu1 %v167_v1  ;;  %v164_v8 = vld [vmem:[%s3709_s23 + $0x10] sm:$0xff]  ;;  %v163_v10 = vld [vmem:[%s3709_s23 + $0x8] sm:$0xff]  ;;  %v162_v12 = vld [vmem:[%s3709_s23] sm:$0xff]  ;;  %s2763_s23 = smov 104  }
   0xa   :  { %2515 = vmatpush3.msra.mxu1 %v167_v1  ;;  %v519_v55 = vld [vmem:[%s3695_s7 + $0x48] sm:$0xff]  ;;  %v518_v56 = vld [vmem:[%s3695_s7 + $0x40] sm:$0xff] }
   0xb   :  { %2516 = vmatprep.subr.mxu1 %v166_v3  ;;  %v515_v57 = vld [vmem:[%s3695_s7 + $0x28] sm:$0xff] }
   0xc   :  { %2517 = vmatpush3.msra.mxu1 %v166_v3 }
   0xd   :  { %2518 = vmatprep.subr.mxu1 %v165_v4 }
   0xe   :  { %2519 = vmatpush3.msra.mxu1 %v165_v4 }
   0xf   :  { %2520 = vmatprep.subr.mxu1 %v164_v8 }
  0x10   :  { %2521 = vmatpush3.msra.mxu1 %v164_v8 }
  0x11   :  { %2522 = vmatprep.subr.mxu1 %v163_v10 }
  0x12   :  { %2523 = vmatpush3.msra.mxu1 %v163_v10 }
  0x13   :  { %2524 = vmatprep.subr.mxu1 %v162_v12 }
  0x14   :  { %2525 = vmatpush3.msra.mxu1 %v162_v12  ;;  %v528_v12 = vld [vmem:[%s3695_s7 + $0x90] sm:$0xff] }
  0x15   :  { %2527 = vmatmul.mubr.msk.f32.vlgmr.msra.gmra.mxu1 %vm168_vm0, %v161_v13  ;;  %599 = vmatprep.subr.mxu1 %v527_v51  ;;  %vm552_vm0 = vcmask 326656   ;;  %v3089_v51 = vld [vmem:[%s3696_s9 + $0x30] sm:$0xff] }
  0x16   :  { %641 = vmatprep.mubr.f32.mxu1 %v2760_v14  ;;  %600 = vmatpush1.msra.mxu1 %v526_v52 }
  0x17   :  { %601 = vmatprep.subr.mxu1 %v523_v53 }
  0x18   :  { %602 = vmatpush1.msra.mxu1 %v522_v54  ;;  %v3100_v54 = vld [vmem:[%s3696_s9 + $0x28] sm:$0xff] }
  0x19   :  { %603 = vmatprep.subr.mxu1 %v519_v55  ;;  %v3108_v55 = vld [vmem:[%s3696_s9 + $0x20] sm:$0xff] }
  0x1a   :  { %604 = vmatpush1.msra.mxu1 %v518_v56 }
  0x1b   :  { %605 = vmatprep.subr.mxu1 %v515_v57  ;;  %v3118_v57 = vld [vmem:[%s3696_s9 + $0x18] sm:$0xff] }
  0x7d   :  { %v61_v17 = vpop.permute.xlu0 %60 }
  0x7e   :  { %vm65_vm3 = vcmp.eq.s32.totalorder %v2901_v16, %v61_v17  ;;  %v525_v17 = vld [vmem:[%s3695_s7 + $0x78] sm:$0xff] }
  0x7f   :  { %v2371_v18 = vsel %vm65_vm3, 1.0, %v2760_v14  ;;  %vm829_vm3 = vcmask 523264  }
  0x80   :  { %2511 = vmatprep.mubr.msk.f32.mxu0 %vm74_vm2, %v2371_v18  ;;  %v524_v18 = vld [vmem:[%s3695_s7 + $0x70] sm:$0xff] }
  0x81   :  { %v64_v19 = vpop.permute.xlu0 %63 }
  0x82   :  { %vm66_vm4 = vcmp.eq.s32.totalorder %v2901_v16, %v64_v19 }
  0x83   :  { %v2372_v20 = vsel %vm66_vm4, 1.0, %v2760_v14 }
  0x84   :  { %2512 = vmatmul.mubr.msk.f32.vlgmr.msra.gmra.mxu0 %vm74_vm2, %v2372_v20  ;;  %v521_v20 = vld [vmem:[%s3695_s7 + $0x58] sm:$0xff]  ;;  %vm944_vm2 = vcmask 523520  }
  0xd5   :  { %v2528_v21 = vpop.f32.mrf.mxu1 }
  0xd6   :  { %254 = vrot.lane.b32.xlu1 %v2528_v21, %s2761_s1  ;;  %262 = vrot.lane.b32.xlu0 %v2528_v21, %s2762_s5 }
  0xd7   :  { %v241_v22 = vpop.f32.mrf.mxu1 }
  0xda   :  { %252 = vrot.lane.b32.xlu1 %v241_v22, %s2761_s1  ;;  %270 = vrot.lane.b32.xlu0 %v2528_v21, %s2763_s23 }
  0xde   :  { %260 = vrot.lane.b32.xlu1 %v241_v22, %s2762_s5  ;;  %278 = vrot.lane.b32.xlu0 %v2528_v21, %s2764_s18 }
  0xe2   :  { %268 = vrot.lane.b32.xlu1 %v241_v22, %s2763_s23  ;;  %286 = vrot.lane.b32.xlu0 %v2528_v21, %s2765_s19 }
  0xe6   :  { %276 = vrot.lane.b32.xlu1 %v241_v22, %s2764_s18  ;;  %337 = vperm.xlu0 %2625, %v326_v23  }
  0xea   :  { %284 = vrot.lane.b32.xlu0 %v241_v22, %s2765_s19  ;;  %334 = vperm.xlu1 %2626, %v325_v24  }
 0x144   :  { %v2513_v29 = vpop.f32.mrf.mxu0 }
 0x145   :  { %318 = vrot.lane.b32.xlu1 %v2513_v29, %s2766_s0 }
 0x146   :  { %v151_v39 = vpop.f32.mrf.mxu0 }
 0x148   :  { %v255_v25 = vpop.permute.xlu1 %254  ;;  %v263_v26 = vpop.permute.xlu0 %262 }
 0x149   :  { %v259_v27 = vmax.f32 %v2528_v21, %v255_v25  ;;  %v520_v21 = vld [vmem:[%s3695_s7 + $0x50] sm:$0xff] }
 0x14b   :  { %v267_v28 = vmax.f32 %v259_v27, %v263_v26 }
 0x14c   :  { %v253_v30 = vpop.permute.xlu1 %252  ;;  %v271_v31 = vpop.permute.xlu0 %270 }
 0x14d   :  { %v275_v32 = vmax.f32 %v267_v28, %v271_v31  ;;  %v258_v36 = vmax.f32 %v241_v22, %v253_v30  ;;  %v517_v22 = vld [vmem:[%s3695_s7 + $0x38] sm:$0xff] }
 0x14f   :  { %304 = vrot.lane.b32.xlu1 %v275_v32, %s2767_s25 }
 0x150   :  { %v261_v33 = vpop.permute.xlu1 %260  ;;  %v279_v34 = vpop.permute.xlu0 %278 }
 0x151   :  { %v283_v35 = vmax.f32 %v275_v32, %v279_v34  ;;  %v266_v38 = vmax.f32 %v258_v36, %v261_v33  ;;  %v514_v34 = vld [vmem:[%s3695_s7 + $0x20] sm:$0xff]  ;;  %v511_v36 = vld [vmem:[%s3695_s7 + $0x8] sm:$0xff] }
 0x152   :  { %606 = vmatpush1.msra.mxu1 %v514_v34 }
 0x153   :  { %296 = vrot.lane.b32.xlu1 %v283_v35, %s2765_s19  ;;  %607 = vmatprep.subr.mxu1 %v511_v36 }
 0x154   :  { %v269_v37 = vpop.permute.xlu1 %268  ;;  %v287_v59 = vpop.permute.xlu0 %286 }
 0x155   :  { %v274_v40 = vmax.f32 %v266_v38, %v269_v37  ;;  %v291_v62 = vmax.f32 %v283_v35, %v287_v59  ;;  %v516_v35 = vld [vmem:[%s3695_s7 + $0x30] sm:$0xff]  ;;  %v513_v37 = vld [vmem:[%s3695_s7 + $0x18] sm:$0xff]  ;;  %v510_v38 = vld [vmem:[%s3695_s7] sm:$0xff] }
 0x156   :  { %608 = vmatpush1.msra.mxu1 %v510_v38 }
 0x157   :  { %316 = vrot.lane.b32.xlu1 %v151_v39, %s2766_s0  ;;  %v512_v39 = vld [vmem:[%s3695_s7 + $0x10] sm:$0xff] }
 0x158   :  { %v277_v41 = vpop.permute.xlu1 %276 }
 0x159   :  { %v282_v42 = vmax.f32 %v274_v40, %v277_v41 }
 0x15b   :  { %294 = vrot.lane.b32.xlu0 %v282_v42, %s2765_s19  ;;  %343 = vperm.xlu1 %2626, %v328_v43   ;;  %v3032_v43 = vld [vmem:[%s3696_s9 + $0x70] sm:$0xff] }
 0x15f   :  { %302 = vrot.lane.b32.xlu0 %v274_v40, %s2767_s25  ;;  %349 = vperm.xlu1 %2626, %v330_v44   ;;  %v3025_v40 = vld [vmem:[%s3696_s9 + $0x78] sm:$0xff]  ;;  %v3039_v44 = vld [vmem:[%s3696_s9 + $0x68] sm:$0xff] }
 0x160   :  { %849 = vmatprep.subr.mxu1 %v3025_v40 }
 0x161   :  { %v338_v61 = vpop.permute.xlu0 %337 }
 0x162   :  { %vm358_vm9 = vcmp.eq.s32.totalorder %v2901_v16, %v338_v61  ;;  %v3144_v61 = vld [vmem:[%s3696_s9] sm:$0xff] }
 0x163   :  { %340 = vperm.xlu0 %2625, %v327_v45   ;;  %355 = vperm.xlu1 %2626, %v332_v46   ;;  %v2379_v13 = vsel %vm358_vm9, 1.0, %v2760_v14  ;;  %v3047_v45 = vld [vmem:[%s3696_s9 + $0x60] sm:$0xff]  ;;  %v3054_v46 = vld [vmem:[%s3696_s9 + $0x58] sm:$0xff] }
 0x165   :  { %v335_v48 = vpop.permute.xlu1 %334  ;;  %v285_v2 = vpop.permute.xlu0 %284 }
 0x166   :  { %vm357_vm6 = vcmp.eq.s32.totalorder %v2901_v16, %v335_v48  ;;  %v290_v5 = vmax.f32 %v282_v42, %v285_v2  ;;  %v3069_v48 = vld [vmem:[%s3696_s9 + $0x48] sm:$0xff]  ;;  %v530_v2 = vld [vmem:[%s3697_s8] sm:$0xf]  ;;  %s2768_s8 = smov 64  }
 0x167   :  { %346 = vperm.xlu0 %2625, %v329_v47   ;;  %v2378_v49 = vsel %vm357_vm6, 1.0, %v2760_v14  ;;  %v3062_v47 = vld [vmem:[%s3696_s9 + $0x50] sm:$0xff] }
 0x168   :  { %2533 = vmatprep.mubr.msk.f32.mxu0 %vm311_vm5, %v2378_v49  ;;  %v3076_v49 = vld [vmem:[%s3696_s9 + $0x40] sm:$0xff] }
 0x16b   :  { %352 = vperm.xlu0 %2625, %v331_v50   ;;  %v3082_v50 = vld [vmem:[%s3696_s9 + $0x38] sm:$0xff] }
 0x1b7   :  { %v319_v58 = vpop.permute.xlu1 %318 }
 0x1c1   :  { %v305_v60 = vpop.permute.xlu1 %304 }
 0x1c5   :  { %v297_v63 = vpop.permute.xlu1 %296 }
 0x1c6   :  { %v310_v0 = vsel %vm308_vm7, %v291_v62, %v297_v63 }
 0x1c7   :  { %v313_v1 = vsel %vm311_vm5, %v310_v0, %v305_v60  ;;  %v3136_v60 = vld [vmem:[%s3696_s9 + $0x8] sm:$0xff]  ;;  %v3187_v0 = vshrl.u32 %v57_v15, 7 }
 0x1c8   :  { %v324_v3 = vsel %vm322_vm8, %v313_v1, %v319_v58  ;;  %v3126_v58 = vld [vmem:[%s3696_s9 + $0x10] sm:$0xff] }
 0x1c9   :  { %2529 = vmatprep.subr.mxu0 %v324_v3  ;;  %v317_v8 = vpop.permute.xlu1 %316  ;;  %v542_v1 = vsub.s32 2, %v3187_v0 }
 0x1ca   :  { %2530 = vmatpush3.msra.mxu0 %v324_v3  ;;  %v546_v3 = vsub.s32 3, %v3187_v0 }
 0x1cd   :  { %v295_v4 = vpop.permute.xlu0 %294 }
 0x1ce   :  { %v309_v6 = vsel %vm308_vm7, %v290_v5, %v295_v4  ;;  %v3194_v4 = vrot.slane %v530_v2, %v542_v1  ;;  %v534_v5 = vsub.s32 0, %v3187_v0 }
 0x1d1   :  { %v303_v7 = vpop.permute.xlu0 %302 }
 0x1d2   :  { %v312_v9 = vsel %vm311_vm5, %v309_v6, %v303_v7  ;;  %v3197_v6 = vrot.slane %v530_v2, %v546_v3 }
 0x1d3   :  { %v323_v10 = vsel %vm322_vm8, %v312_v9, %v317_v8  ;;  %v538_v9 = vsub.s32 1, %v3187_v0 }
 0x1d4   :  { %2531 = vmatprep.subr.mxu0 %v323_v10 }
 0x1d5   :  { %2532 = vmatpush3.msra.mxu0 %v323_v10 }
 0x1d6   :  { %2534 = vmatmul.mubr.msk.f32.vlgmr.msra.gmra.mxu0 %vm311_vm5, %v2379_v13  ;;  %712 = vmatprep.subr.mxu0 %v529_v11  ;;  %v344_v19 = vpop.permute.xlu1 %343 }
 0x1d7   :  { %713 = vmatpush1.msra.mxu0 %v528_v12  ;;  %vm360_vm10 = vcmp.eq.s32.totalorder %v2901_v16, %v344_v19  ;;  %v3207_v12 = vrot.slane %v530_v2, %v534_v5  ;;  %v3212_v19 = vrot.slane %v530_v2, %v538_v9 }
 0x1d8   :  { %714 = vmatprep.subr.mxu0 %v525_v17  ;;  %v2381_v26 = vsel %vm360_vm10, 1.0, %v2760_v14 }
 0x1d9   :  { %715 = vmatpush1.msra.mxu0 %v524_v18 }
 0x1da   :  { %716 = vmatprep.subr.mxu0 %v521_v20  ;;  %v350_v23 = vpop.permute.xlu1 %349 }
 0x1db   :  { %717 = vmatpush1.msra.mxu0 %v520_v21  ;;  %vm362_vm12 = vcmp.eq.s32.totalorder %v2901_v16, %v350_v23 }
 0x1dc   :  { %718 = vmatprep.subr.mxu0 %v517_v22  ;;  %v2383_v30 = vsel %vm362_vm12, 1.0, %v2760_v14 }
 0x1dd   :  { %719 = vmatpush1.msra.mxu0 %v516_v35 }
 0x1de   :  { %v341_v24 = vpop.permute.xlu0 %340  ;;  %v356_v28 = vpop.permute.xlu1 %355  ;;  %720 = vmatprep.subr.mxu0 %v513_v37 }
 0x1df   :  { %vm359_vm11 = vcmp.eq.s32.totalorder %v2901_v16, %v341_v24  ;;  %vm364_vm14 = vcmp.eq.s32.totalorder %v2901_v16, %v356_v28  ;;  %721 = vmatpush1.msra.mxu0 %v512_v39 }
 0x1e0   :  { %v2380_v25 = vsel %vm359_vm11, 1.0, %v2760_v14  ;;  %v2385_v33 = vsel %vm364_vm14, 1.0, %v2760_v14  ;;  %967 = vmatprep.subr.mxu0 %v3025_v40 }
 0x1e1   :  { %2536 = vmatprep.mubr.msk.f32.mxu0 %vm311_vm5, %v2380_v25 }
 0x1e2   :  { %2537 = vmatmul.mubr.msk.f32.gmra.mxu0 %vm311_vm5, %v2381_v26  ;;  %v347_v27 = vpop.permute.xlu0 %346 }
 0x1e3   :  { %vm361_vm13 = vcmp.eq.s32.totalorder %v2901_v16, %v347_v27 }
 0x1e4   :  { %v2382_v29 = vsel %vm361_vm13, 1.0, %v2760_v14  ;;  %vm2769_vm13 = vmmov 0  }
 0x1e5   :  { %2539 = vmatprep.mubr.msk.f32.mxu0 %vm311_vm5, %v2382_v29 }
 0x1e6   :  { %2540 = vmatmul.mubr.msk.f32.gmra.mxu0 %vm311_vm5, %v2383_v30  ;;  %v353_v31 = vpop.permute.xlu0 %352 }
 0x1e7   :  { %vm363_vm15 = vcmp.eq.s32.totalorder %v2901_v16, %v353_v31 }
 0x1e8   :  { %v2384_v32 = vsel %vm363_vm15, 1.0, %v2760_v14  ;;  %vm2345_vm15 = vcmask 39936  }
 0x1e9   :  { %2542 = vmatprep.mubr.msk.f32.mxu0 %vm311_vm5, %v2384_v32 }
 0x1ea   :  { %2543 = vmatmul.mubr.msk.f32.gmra.mxu0 %vm311_vm5, %v2385_v33  ;;  %vm2021_vm5 = vcmask 7168  }
 0x1eb   :  { %754 = vmatprep.mubr.f32.mxu0 %v2760_v14 }
 0x296   :  { %v2535_v41 = vpop.f32.mrf.mxu0 }
 0x298   :  { %v471_v42 = vpop.f32.mrf.mxu0 }
 0x299   :  { %2394 = vmatmul.mubr.msk.f32.vlgmr.msra.gmra.mxu1 %vm552_vm0, %v471_v42  ;;  %2402 = vmatmul.mubr.msk.f32.vlgmr.msra.gmra.mxu0 %vm552_vm0, %v471_v42 }
 0x29a   :  { %647 = vmatprep.mubr.f32.mxu1 %v2760_v14  ;;  %760 = vmatprep.mubr.f32.mxu0 %v2760_v14 }
 0x29b   :  { %850 = vmatpush1.msra.mxu1 %v3032_v43  ;;  %968 = vmatpush1.msra.mxu0 %v3032_v43 }
 0x29c   :  { %851 = vmatprep.subr.mxu1 %v3039_v44  ;;  %969 = vmatprep.subr.mxu0 %v3039_v44 }
 0x29d   :  { %2395 = vmatmul.mubr.msk.f32.gmra.mxu1 %vm552_vm0, %v2535_v41  ;;  %2403 = vmatmul.mubr.msk.f32.gmra.mxu0 %vm552_vm0, %v2535_v41 }
 0x29e   :  { %852 = vmatpush1.msra.mxu1 %v3047_v45  ;;  %653 = vmatprep.mubr.f32.mxu1 %v2760_v14 }
 0x29f   :  { %766 = vmatprep.mubr.f32.mxu0 %v2760_v14  ;;  %853 = vmatprep.subr.mxu1 %v3054_v46 }
 0x2a0   :  { %854 = vmatpush1.msra.mxu1 %v3062_v47  ;;  %970 = vmatpush1.msra.mxu0 %v3047_v45 }
 0x2a1   :  { %855 = vmatprep.subr.mxu1 %v3069_v48  ;;  %971 = vmatprep.subr.mxu0 %v3054_v46 }
 0x2a2   :  { %v2538_v52 = vpop.f32.mrf.mxu0  ;;  %856 = vmatpush1.msra.mxu1 %v3076_v49  ;;  %972 = vmatpush1.msra.mxu0 %v3062_v47 }
 0x2a3   :  { %857 = vmatprep.subr.mxu1 %v3082_v50  ;;  %973 = vmatprep.subr.mxu0 %v3069_v48 }
 0x2a4   :  { %v481_v53 = vpop.f32.mrf.mxu0  ;;  %858 = vmatpush1.msra.mxu1 %v3089_v51  ;;  %974 = vmatpush1.msra.mxu0 %v3076_v49 }
 0x2a5   :  { %2396 = vmatmul.mubr.msk.f32.gmra.mxu1 %vm552_vm0, %v481_v53  ;;  %2404 = vmatmul.mubr.msk.f32.gmra.mxu0 %vm552_vm0, %v481_v53 }
 0x2a6   :  { %659 = vmatprep.mubr.f32.mxu1 %v2760_v14  ;;  %772 = vmatprep.mubr.f32.mxu0 %v2760_v14  ;;  %v2541_v56 = vpop.f32.mrf.mxu0 }
 0x2a7   :  { %859 = vmatprep.subr.mxu1 %v3100_v54  ;;  %975 = vmatprep.subr.mxu0 %v3082_v50 }
 0x2a8   :  { %860 = vmatpush1.msra.mxu1 %v3108_v55  ;;  %976 = vmatpush1.msra.mxu0 %v3089_v51  ;;  %v491_v59 = vpop.f32.mrf.mxu0 }
 0x2a9   :  { %2397 = vmatmul.mubr.msk.f32.gmra.mxu1 %vm552_vm0, %v2538_v52  ;;  %2405 = vmatmul.mubr.msk.f32.gmra.mxu0 %vm552_vm0, %v2538_v52 }
 0x2aa   :  { %665 = vmatprep.mubr.f32.mxu1 %v2760_v14  ;;  %778 = vmatprep.mubr.f32.mxu0 %v2760_v14  ;;  %v2544_v62 = vpop.f32.mrf.mxu0 }
 0x2ab   :  { %861 = vmatprep.subr.mxu1 %v3118_v57  ;;  %977 = vmatprep.subr.mxu0 %v3100_v54 }
 0x2ac   :  { %862 = vmatpush1.msra.mxu1 %v3126_v58  ;;  %978 = vmatpush1.msra.mxu0 %v3108_v55  ;;  %v501_v63 = vpop.f32.mrf.mxu0 }
 0x2ad   :  { %2398 = vmatmul.mubr.msk.f32.gmra.mxu1 %vm552_vm0, %v491_v59  ;;  %2406 = vmatmul.mubr.msk.f32.gmra.mxu0 %vm552_vm0, %v491_v59 }
 0x2ae   :  { %671 = vmatprep.mubr.f32.mxu1 %v2760_v14  ;;  %784 = vmatprep.mubr.f32.mxu0 %v2760_v14 }
 0x2af   :  { %863 = vmatprep.subr.mxu1 %v3136_v60  ;;  %979 = vmatprep.subr.mxu0 %v3118_v57 }
 0x2b0   :  { %864 = vmatpush1.msra.mxu1 %v3144_v61  ;;  %980 = vmatpush1.msra.mxu0 %v3126_v58 }
 0x2b1   :  { %2399 = vmatmul.mubr.msk.f32.gmra.mxu1 %vm552_vm0, %v2541_v56  ;;  %2407 = vmatmul.mubr.msk.f32.gmra.mxu0 %vm552_vm0, %v2541_v56 }
 0x2b2   :  { %677 = vmatprep.mubr.f32.mxu1 %v2760_v14  ;;  %790 = vmatprep.mubr.f32.mxu0 %v2760_v14 }
 0x2b3   :  { %981 = vmatprep.subr.mxu0 %v3136_v60  ;;  %1088 = vmatprep.subr.mxu1 %v3025_v40 }
 0x2b4   :  { %982 = vmatpush1.msra.mxu0 %v3144_v61 }
 0x2b5   :  { %2400 = vmatmul.mubr.msk.f32.gmra.mxu1 %vm552_vm0, %v501_v63  ;;  %2408 = vmatmul.mubr.msk.f32.gmra.mxu0 %vm552_vm0, %v501_v63 }
 0x2b6   :  { %683 = vmatprep.mubr.f32.mxu1 %v2760_v14  ;;  %796 = vmatprep.mubr.f32.mxu0 %v2760_v14 }
 0x2b7   :  { %1209 = vmatprep.subr.mxu0 %v3025_v40 }
 0x2b9   :  { %2401 = vmatmul.mubr.msk.f32.gmra.mxu1 %vm552_vm0, %v2544_v62  ;;  %2409 = vmatmul.mubr.msk.f32.gmra.mxu0 %vm552_vm0, %v2544_v62 }
 0x2ba   :  { %897 = vmatprep.mubr.f32.mxu1 %v2760_v14  ;;  %1015 = vmatprep.mubr.f32.mxu0 %v2760_v14 }
 0x2bd   :  { %898 = vmatmul.mubr.f32.vlgmr.msra.gmra.mxu1 %v2760_v14 }
 0x2be   :  { %1089 = vmatpush1.msra.mxu1 %v3032_v43  ;;  %1136 = vmatprep.mubr.f32.mxu1 %v2760_v14 }
 0x2bf   :  { %1090 = vmatprep.subr.mxu1 %v3039_v44 }
 0x2c0   :  { %1091 = vmatpush1.msra.mxu1 %v3047_v45 }
 0x2c1   :  { %1092 = vmatprep.subr.mxu1 %v3054_v46 }
 0x2c2   :  { %1093 = vmatpush1.msra.mxu1 %v3062_v47 }
 0x2c3   :  { %1094 = vmatprep.subr.mxu1 %v3069_v48 }
 0x2c4   :  { %1095 = vmatpush1.msra.mxu1 %v3076_v49 }
 0x2c5   :  { %1096 = vmatprep.subr.mxu1 %v3082_v50 }
 0x2c6   :  { %1097 = vmatpush1.msra.mxu1 %v3089_v51 }
 0x2c7   :  { %1098 = vmatprep.subr.mxu1 %v3100_v54 }
 0x2c8   :  { %1099 = vmatpush1.msra.mxu1 %v3108_v55 }
 0x2c9   :  { %1100 = vmatprep.subr.mxu1 %v3118_v57 }
 0x2ca   :  { %1101 = vmatpush1.msra.mxu1 %v3126_v58 }
 0x2cb   :  { %1102 = vmatprep.subr.mxu1 %v3136_v60 }
 0x2cc   :  { %1103 = vmatpush1.msra.mxu1 %v3144_v61 }
 0x2cd   :  { %1330 = vmatprep.subr.mxu1 %v3025_v40 }
 0x359   :  { %v3199_v7 = vpop.f32.mrf.mxu1  ;;  %v756_v8 = vpop.f32.mrf.mxu0 }
 0x35a   :  { %v3202_v15 = vadd.f32 %v756_v8, %v3194_v4 }
 0x35b   :  { %v3205_v10 = vpop.f32.mrf.mxu1  ;;  %v758_v11 = vpop.f32.mrf.mxu0 }
 0x35c   :  { %v3210_v13 = vadd.f32 %v758_v11, %v3197_v6 }
 0x35d   :  { %v649_v17 = vpop.f32.mrf.mxu1  ;;  %v762_v18 = vpop.f32.mrf.mxu0 }
 0x35e   :  { %v650_v20 = vadd.f32 %v649_v17, %v3207_v12  ;;  %v763_v21 = vadd.f32 %v762_v18, %v3194_v4 }
 0x35f   :  { %v651_v22 = vpop.f32.mrf.mxu1  ;;  %v764_v23 = vpop.f32.mrf.mxu0 }
 0x360   :  { %v652_v24 = vadd.f32 %v651_v22, %v3212_v19  ;;  %v765_v25 = vadd.f32 %v764_v23, %v3197_v6 }
 0x365   :  { %v655_v26 = vpop.f32.mrf.mxu1  ;;  %v768_v27 = vpop.f32.mrf.mxu0 }
 0x366   :  { %v656_v28 = vadd.f32 %v655_v26, %v3207_v12  ;;  %v769_v29 = vadd.f32 %v768_v27, %v3194_v4 }
 0x367   :  { %v657_v30 = vpop.f32.mrf.mxu1  ;;  %v770_v31 = vpop.f32.mrf.mxu0 }
 0x368   :  { %v658_v32 = vadd.f32 %v657_v30, %v3212_v19  ;;  %v771_v33 = vadd.f32 %v770_v31, %v3197_v6 }
 0x369   :  { %v661_v34 = vpop.f32.mrf.mxu1  ;;  %v774_v35 = vpop.f32.mrf.mxu0 }
 0x36a   :  { %v662_v36 = vadd.f32 %v661_v34, %v3207_v12  ;;  %v775_v37 = vadd.f32 %v774_v35, %v3194_v4 }
 0x36b   :  { %v663_v38 = vpop.f32.mrf.mxu1  ;;  %v776_v39 = vpop.f32.mrf.mxu0 }
 0x36c   :  { %v664_v41 = vadd.f32 %v663_v38, %v3212_v19  ;;  %v777_v42 = vadd.f32 %v776_v39, %v3197_v6 }
 0x36d   :  { %v667_v52 = vpop.f32.mrf.mxu1  ;;  %v780_v53 = vpop.f32.mrf.mxu0 }
 0x36e   :  { %v668_v56 = vadd.f32 %v667_v52, %v3207_v12  ;;  %v781_v59 = vadd.f32 %v780_v53, %v3194_v4 }
 0x36f   :  { %v669_v62 = vpop.f32.mrf.mxu1  ;;  %v782_v63 = vpop.f32.mrf.mxu0 }
 0x370   :  { %v670_v1 = vadd.f32 %v669_v62, %v3212_v19  ;;  %v783_v2 = vadd.f32 %v782_v63, %v3197_v6  ;;  %v3230_v3 = vadd.f32 %v781_v59, %v662_v36  ;;  %v3232_v5 = vadd.f32 %v775_v37, %v668_v56 }
 0x371   :  { %v673_v8 = vpop.f32.mrf.mxu1  ;;  %v786_v9 = vpop.f32.mrf.mxu0  ;;  %v644_v59 = vadd.f32 %v3199_v7, %v3207_v12 }
 0x372   :  { %v674_v11 = vadd.f32 %v673_v8, %v3207_v12  ;;  %v787_v17 = vadd.f32 %v786_v9, %v3194_v4  ;;  %v3236_v18 = vadd.f32 %v783_v2, %v664_v41  ;;  %v3238_v22 = vadd.f32 %v777_v42, %v670_v1 }
 0x373   :  { %v675_v23 = vpop.f32.mrf.mxu1  ;;  %v788_v26 = vpop.f32.mrf.mxu0 }
 0x374   :  { %v676_v27 = vadd.f32 %v675_v23, %v3212_v19  ;;  %v789_v30 = vadd.f32 %v788_v26, %v3197_v6  ;;  %v3242_v31 = vadd.f32 %v787_v17, %v656_v28  ;;  %v3244_v34 = vadd.f32 %v769_v29, %v674_v11 }
 0x375   :  { %v679_v35 = vpop.f32.mrf.mxu1  ;;  %v792_v36 = vpop.f32.mrf.mxu0 }
 0x376   :  { %v680_v37 = vadd.f32 %v679_v35, %v3207_v12  ;;  %v793_v38 = vadd.f32 %v792_v36, %v3194_v4  ;;  %v3248_v39 = vadd.f32 %v789_v30, %v658_v32  ;;  %v3250_v41 = vadd.f32 %v771_v33, %v676_v27 }
 0x377   :  { %v681_v42 = vpop.f32.mrf.mxu1  ;;  %v794_v52 = vpop.f32.mrf.mxu0 }
 0x378   :  { %v682_v53 = vadd.f32 %v681_v42, %v3212_v19  ;;  %v795_v56 = vadd.f32 %v794_v52, %v3197_v6  ;;  %v3254_v28 = vadd.f32 %v793_v38, %v650_v20  ;;  %v3256_v29 = vadd.f32 %v763_v21, %v680_v37 }
 0x379   :  { %v685_v62 = vpop.f32.mrf.mxu1  ;;  %v798_v63 = vpop.f32.mrf.mxu0 }
 0x37a   :  { %v686_v32 = vadd.f32 %v685_v62, %v3207_v12  ;;  %v799_v33 = vadd.f32 %v798_v63, %v3194_v4  ;;  %v3262_v1 = vadd.f32 %v795_v56, %v652_v24  ;;  %v3264_v2 = vadd.f32 %v765_v25, %v682_v53 }
 0x37b   :  { %v687_v8 = vpop.f32.mrf.mxu1  ;;  %v800_v12 = vpop.f32.mrf.mxu0  ;;  %v646_v24 = vadd.f32 %v3205_v10, %v3212_v19 }
 0x37c   :  { %v688_v9 = vadd.f32 %v687_v8, %v3212_v19  ;;  %v827_v20 = vadd.f32 %v799_v33, %v644_v59  ;;  %v3268_v21 = vadd.f32 %v3202_v15, %v686_v32  ;;  %v801_v4 = vadd.f32 %v800_v12, %v3197_v6  ;;  %v819_v59 = vld [vmem:[%s3698_s3] sm:$0xff] }
 0x37d   :  { %v899_v11 = vpop.f32.mrf.mxu1  ;;  %v938_v62 = vsub.f32 1.0, %v819_v59 }
 0x37e   :  { %v904_v17 = vadd.f32 %v899_v11, %v827_v20  ;;  %v3271_v7 = vadd.f32 %v3210_v13, %v688_v9  ;;  %v828_v25 = vadd.f32 %v801_v4, %v646_v24 }
 0x37f   :  { %v901_v26 = vpop.f32.mrf.mxu1  ;;  %v939_v63 = vmul.f32 0.0, %v938_v62 }
 0x380   :  { %v2410_v23 = vmul.f32 -1.442695, %v904_v17  ;;  %v905_v27 = vadd.f32 %v901_v26, %v828_v25 }
 0x382   :  { %2629 = vpow2.f32 %v2410_v23  ;;  %v2411_v13 = vmul.f32 -1.442695, %v905_v27 }
 0x383   :  { %2631 = vtanh.f32 %v905_v27 }
 0x38f   :  { %v2630_v30 = vpop.eup %2629 }
 0x390   :  { %v909_v35 = vadd.f32 1.0, %v2630_v30  ;;  %v2632_v15 = vpop.eup %2631 }
 0x392   :  { %2633 = vrcp.f32 %v909_v35 }
 0x393   :  { %2635 = vpow2.f32 %v2411_v13 }
 0x39f   :  { %v2634_v36 = vpop.eup %2633 }
 0x3a0   :  { %v920_v37 = vmul.f32 %v2634_v36, %v2632_v15  ;;  %v2636_v38 = vpop.eup %2635  ;;  %v919_v42 = vmul.f32 0.0, %v2634_v36 }
 0x3a1   :  { %v916_v6 = vadd.f32 1.0, %v2636_v38 }
 0x3a2   :  { %922 = vrot.lane.b32.xlu0 %v920_v37, %s2768_s8 }
 0x3a3   :  { %2637 = vrcp.f32 %v916_v6 }
 0x3b0   :  { %v2638_v19 = vpop.eup %2637 }
 0x414   :  { %v923_v52 = vpop.permute.xlu0 %922 }
 0x415   :  { %v925_v10 = vadd.f32 %v923_v52, %v919_v42 }
 0x417   :  { %2639 = vtanh.f32 %v925_v10  ;;  %934 = vrot.lane.b32.xlu0 %v925_v10, %s2768_s8  ;;  %v820_v10 = vld [vmem:[%s3698_s3 + $0x8] sm:$0xff] }
 0x424   :  { %v2640_v53 = vpop.eup %2639 }
 0x425   :  { %v927_v56 = vmul.f32 %v2640_v53, %v2638_v19  ;;  %v1060_v19 = vsub.f32 1.0, %v820_v10 }
 0x427   :  { %929 = vrot.lane.b32.xlu1 %v927_v56, %s2768_s8 }
 0x489   :  { %v935_v32 = vpop.permute.xlu0 %934 }
 0x48a   :  { %v937_v33 = vmul.f32 %v935_v32, %v819_v59 }
 0x48c   :  { %v940_v8 = vadd.f32 %v939_v63, %v937_v33 }
 0x48e   :  { %1038 = vrot.lane.b32.xlu1 %v940_v8, %s2768_s8  ;;  %v1061_v56 = vmul.f32 %v1060_v19, %v940_v8 }
 0x499   :  { %v930_v9 = vpop.permute.xlu1 %929 }
 0x49a   :  { %v932_v20 = vmul.f32 %v930_v9, %v819_v59 }
 0x49c   :  { %v941_v11 = vadd.f32 %v939_v63, %v932_v20  ;;  %943 = vst.msk [vmem:[#allocation2] sm:$0xff] %vm942_vm1, %v932_v20 }
 0x49d   :  { %945 = vst.msk [vmem:[#allocation2 + $0x38] sm:$0xff] %vm944_vm2, %v932_v20 }
 0x49e   :  { %2412 = vmatmul.mubr.msk.f32.vlgmr.msra.gmra.mxu0 %vm829_vm3, %v941_v11  ;;  %v1063_v32 = vmul.f32 %v1060_v19, %v941_v11 }
 0x49f   :  { %1210 = vmatpush1.msra.mxu0 %v3032_v43  ;;  %1257 = vmatprep.mubr.f32.mxu0 %v2760_v14 }
 0x4a0   :  { %1211 = vmatprep.subr.mxu0 %v3039_v44 }
 0x4a1   :  { %1212 = vmatpush1.msra.mxu0 %v3047_v45 }
 0x4a2   :  { %1213 = vmatprep.subr.mxu0 %v3054_v46 }
 0x4a3   :  { %1214 = vmatpush1.msra.mxu0 %v3062_v47 }
 0x4a4   :  { %1215 = vmatprep.subr.mxu0 %v3069_v48 }
 0x4a5   :  { %1216 = vmatpush1.msra.mxu0 %v3076_v49 }
 0x4a6   :  { %1217 = vmatprep.subr.mxu0 %v3082_v50 }
 0x4a7   :  { %1218 = vmatpush1.msra.mxu0 %v3089_v51 }
 0x4a8   :  { %1219 = vmatprep.subr.mxu0 %v3100_v54 }
 0x4a9   :  { %1220 = vmatpush1.msra.mxu0 %v3108_v55 }
 0x4aa   :  { %1221 = vmatprep.subr.mxu0 %v3118_v57 }
 0x4ab   :  { %1222 = vmatpush1.msra.mxu0 %v3126_v58 }
 0x4ac   :  { %1223 = vmatprep.subr.mxu0 %v3136_v60 }
 0x4ad   :  { %1224 = vmatpush1.msra.mxu0 %v3144_v61 }
 0x4ae   :  { %1451 = vmatprep.subr.mxu0 %v3025_v40 }
 0x500   :  { %v1039_v37 = vpop.permute.xlu1 %1038 }
 0x55e   :  { %v1017_v17 = vpop.f32.mrf.mxu0 }
 0x55f   :  { %v1022_v23 = vadd.f32 %v1017_v17, %v3254_v28 }
 0x560   :  { %v1019_v4 = vpop.f32.mrf.mxu0 }
 0x561   :  { %v2413_v12 = vmul.f32 -1.442695, %v1022_v23  ;;  %v1023_v24 = vadd.f32 %v1019_v4, %v3262_v1 }
 0x563   :  { %2641 = vpow2.f32 %v2413_v12  ;;  %v2414_v15 = vmul.f32 -1.442695, %v1023_v24 }
 0x564   :  { %2643 = vtanh.f32 %v1023_v24 }
 0x570   :  { %v2642_v25 = vpop.eup %2641 }
 0x571   :  { %v1027_v26 = vadd.f32 1.0, %v2642_v25  ;;  %v2644_v27 = vpop.eup %2643 }
 0x573   :  { %2645 = vrcp.f32 %v1027_v26 }
 0x574   :  { %2647 = vpow2.f32 %v2414_v15 }
 0x580   :  { %v2646_v30 = vpop.eup %2645 }
 0x581   :  { %v1042_v35 = vmul.f32 %v2646_v30, %v2644_v27  ;;  %v2648_v36 = vpop.eup %2647  ;;  %v1041_v28 = vmul.f32 %v2646_v30, %v1039_v37 }
 0x582   :  { %v1034_v13 = vadd.f32 1.0, %v2648_v36 }
 0x583   :  { %1044 = vrot.lane.b32.xlu0 %v1042_v35, %s2768_s8 }
 0x584   :  { %2649 = vrcp.f32 %v1034_v13 }
 0x591   :  { %v2650_v1 = vpop.eup %2649 }
 0x5f5   :  { %v1045_v38 = vpop.permute.xlu0 %1044 }
 0x5f6   :  { %v1047_v6 = vadd.f32 %v1045_v38, %v1041_v28  ;;  %v821_v38 = vld [vmem:[%s3698_s3 + $0x10] sm:$0xff] }
 0x5f8   :  { %2651 = vtanh.f32 %v1047_v6  ;;  %1056 = vrot.lane.b32.xlu0 %v1047_v6, %s2768_s8  ;;  %v1181_v6 = vsub.f32 1.0, %v821_v38 }
 0x605   :  { %v2652_v42 = vpop.eup %2651 }
 0x606   :  { %v1049_v52 = vmul.f32 %v2652_v42, %v2650_v1 }
 0x608   :  { %1051 = vrot.lane.b32.xlu1 %v1049_v52, %s2768_s8 }
 0x66a   :  { %v1057_v53 = vpop.permute.xlu0 %1056 }
 0x66b   :  { %v1059_v59 = vmul.f32 %v1057_v53, %v820_v10 }
 0x66d   :  { %v1062_v62 = vadd.f32 %v1061_v56, %v1059_v59 }
 0x66f   :  { %1159 = vrot.lane.b32.xlu1 %v1062_v62, %s2768_s8  ;;  %v1182_v42 = vmul.f32 %v1181_v6, %v1062_v62 }
 0x67a   :  { %v1052_v63 = vpop.permute.xlu1 %1051 }
 0x67b   :  { %v1054_v33 = vmul.f32 %v1052_v63, %v820_v10 }
 0x67d   :  { %v1064_v9 = vadd.f32 %v1063_v32, %v1054_v33  ;;  %1065 = vst.msk [vmem:[#allocation2 + $0x8] sm:$0xff] %vm942_vm1, %v1054_v33 }
 0x67e   :  { %1066 = vst.msk [vmem:[#allocation2 + $0x30] sm:$0xff] %vm944_vm2, %v1054_v33 }
 0x67f   :  { %2415 = vmatmul.mubr.msk.f32.vlgmr.msra.gmra.mxu1 %vm829_vm3, %v1064_v9  ;;  %v1184_v53 = vmul.f32 %v1181_v6, %v1064_v9 }
 0x680   :  { %1331 = vmatpush1.msra.mxu1 %v3032_v43  ;;  %1378 = vmatprep.mubr.f32.mxu1 %v2760_v14 }
 0x681   :  { %1332 = vmatprep.subr.mxu1 %v3039_v44 }
 0x682   :  { %1333 = vmatpush1.msra.mxu1 %v3047_v45 }
 0x683   :  { %1334 = vmatprep.subr.mxu1 %v3054_v46 }
 0x684   :  { %1335 = vmatpush1.msra.mxu1 %v3062_v47 }
 0x685   :  { %1336 = vmatprep.subr.mxu1 %v3069_v48 }
 0x686   :  { %1337 = vmatpush1.msra.mxu1 %v3076_v49 }
 0x687   :  { %1338 = vmatprep.subr.mxu1 %v3082_v50 }
 0x688   :  { %1339 = vmatpush1.msra.mxu1 %v3089_v51 }
 0x689   :  { %1340 = vmatprep.subr.mxu1 %v3100_v54 }
 0x68a   :  { %1341 = vmatpush1.msra.mxu1 %v3108_v55 }
 0x68b   :  { %1342 = vmatprep.subr.mxu1 %v3118_v57 }
 0x68c   :  { %1343 = vmatpush1.msra.mxu1 %v3126_v58 }
 0x68d   :  { %1344 = vmatprep.subr.mxu1 %v3136_v60 }
 0x68e   :  { %1345 = vmatpush1.msra.mxu1 %v3144_v61 }
 0x68f   :  { %1572 = vmatprep.subr.mxu1 %v3025_v40 }
 0x6e1   :  { %v1160_v35 = vpop.permute.xlu1 %1159 }
 0x73f   :  { %v1138_v8 = vpop.f32.mrf.mxu1 }
 0x740   :  { %v1143_v20 = vadd.f32 %v1138_v8, %v3242_v31 }
 0x741   :  { %v1140_v17 = vpop.f32.mrf.mxu1 }
 0x742   :  { %v2416_v11 = vmul.f32 -1.442695, %v1143_v20  ;;  %v1144_v23 = vadd.f32 %v1140_v17, %v3248_v39 }
 0x744   :  { %2653 = vpow2.f32 %v2416_v11  ;;  %v2417_v27 = vmul.f32 -1.442695, %v1144_v23 }
 0x745   :  { %2655 = vtanh.f32 %v1144_v23 }
 0x751   :  { %v2654_v12 = vpop.eup %2653 }
 0x752   :  { %v1148_v4 = vadd.f32 1.0, %v2654_v12  ;;  %v2656_v24 = vpop.eup %2655 }
 0x754   :  { %2657 = vrcp.f32 %v1148_v4 }
 0x755   :  { %2659 = vpow2.f32 %v2417_v27 }
 0x761   :  { %v2658_v25 = vpop.eup %2657 }
 0x762   :  { %v1163_v26 = vmul.f32 %v2658_v25, %v2656_v24  ;;  %v2660_v30 = vpop.eup %2659  ;;  %v1162_v31 = vmul.f32 %v2658_v25, %v1160_v35  ;;  %v822_v35 = vld [vmem:[%s3698_s3 + $0x18] sm:$0xff] }
 0x763   :  { %v1155_v15 = vadd.f32 1.0, %v2660_v30 }
 0x764   :  { %1165 = vrot.lane.b32.xlu0 %v1163_v26, %s2768_s8 }
 0x765   :  { %2661 = vrcp.f32 %v1155_v15  ;;  %v1302_v15 = vsub.f32 1.0, %v822_v35 }
 0x772   :  { %v2662_v39 = vpop.eup %2661 }
 0x7d6   :  { %v1166_v36 = vpop.permute.xlu0 %1165 }
 0x7d7   :  { %v1168_v37 = vadd.f32 %v1166_v36, %v1162_v31 }
 0x7d9   :  { %2663 = vtanh.f32 %v1168_v37  ;;  %1177 = vrot.lane.b32.xlu0 %v1168_v37, %s2768_s8 }
 0x7e6   :  { %v2664_v13 = vpop.eup %2663 }
 0x7e7   :  { %v1170_v28 = vmul.f32 %v2664_v13, %v2662_v39 }
 0x7e9   :  { %1172 = vrot.lane.b32.xlu1 %v1170_v28, %s2768_s8 }
 0x84b   :  { %v1178_v1 = vpop.permute.xlu0 %1177 }
 0x84c   :  { %v1180_v52 = vmul.f32 %v1178_v1, %v821_v38 }
 0x84e   :  { %v1183_v10 = vadd.f32 %v1182_v42, %v1180_v52 }
 0x850   :  { %1280 = vrot.lane.b32.xlu1 %v1183_v10, %s2768_s8  ;;  %v1303_v36 = vmul.f32 %v1302_v15, %v1183_v10 }
 0x85b   :  { %v1173_v19 = vpop.permute.xlu1 %1172 }
 0x85c   :  { %v1175_v56 = vmul.f32 %v1173_v19, %v821_v38 }
 0x85e   :  { %v1185_v59 = vadd.f32 %v1184_v53, %v1175_v56  ;;  %1186 = vst.msk [vmem:[#allocation2 + $0x10] sm:$0xff] %vm942_vm1, %v1175_v56 }
 0x85f   :  { %1187 = vst.msk [vmem:[#allocation2 + $0x28] sm:$0xff] %vm944_vm2, %v1175_v56 }
 0x860   :  { %2418 = vmatmul.mubr.msk.f32.vlgmr.msra.gmra.mxu0 %vm829_vm3, %v1185_v59  ;;  %v1305_v28 = vmul.f32 %v1302_v15, %v1185_v59 }
 0x861   :  { %1452 = vmatpush1.msra.mxu0 %v3032_v43  ;;  %1499 = vmatprep.mubr.f32.mxu0 %v2760_v14 }
 0x862   :  { %1453 = vmatprep.subr.mxu0 %v3039_v44 }
 0x863   :  { %1454 = vmatpush1.msra.mxu0 %v3047_v45 }
 0x864   :  { %1455 = vmatprep.subr.mxu0 %v3054_v46 }
 0x865   :  { %1456 = vmatpush1.msra.mxu0 %v3062_v47 }
 0x866   :  { %1457 = vmatprep.subr.mxu0 %v3069_v48 }
 0x867   :  { %1458 = vmatpush1.msra.mxu0 %v3076_v49 }
 0x868   :  { %1459 = vmatprep.subr.mxu0 %v3082_v50 }
 0x869   :  { %1460 = vmatpush1.msra.mxu0 %v3089_v51 }
 0x86a   :  { %1461 = vmatprep.subr.mxu0 %v3100_v54 }
 0x86b   :  { %1462 = vmatpush1.msra.mxu0 %v3108_v55 }
 0x86c   :  { %1463 = vmatprep.subr.mxu0 %v3118_v57 }
 0x86d   :  { %1464 = vmatpush1.msra.mxu0 %v3126_v58 }
 0x86e   :  { %1465 = vmatprep.subr.mxu0 %v3136_v60 }
 0x86f   :  { %1466 = vmatpush1.msra.mxu0 %v3144_v61 }
 0x870   :  { %1693 = vmatprep.subr.mxu0 %v3025_v40 }
 0x8c2   :  { %v1281_v4 = vpop.permute.xlu1 %1280 }
 0x920   :  { %v1259_v62 = vpop.f32.mrf.mxu0 }
 0x921   :  { %v1264_v63 = vadd.f32 %v1259_v62, %v3230_v3 }
 0x922   :  { %v1261_v33 = vpop.f32.mrf.mxu0 }
 0x923   :  { %v2419_v32 = vmul.f32 -1.442695, %v1264_v63  ;;  %v1265_v9 = vadd.f32 %v1261_v33, %v3236_v18 }
 0x925   :  { %2665 = vpow2.f32 %v2419_v32  ;;  %v2420_v12 = vmul.f32 -1.442695, %v1265_v9 }
 0x926   :  { %2667 = vtanh.f32 %v1265_v9 }
 0x932   :  { %v2666_v8 = vpop.eup %2665 }
 0x933   :  { %v1269_v20 = vadd.f32 1.0, %v2666_v8  ;;  %v2668_v11 = vpop.eup %2667 }
 0x935   :  { %2669 = vrcp.f32 %v1269_v20 }
 0x936   :  { %2671 = vpow2.f32 %v2420_v12  ;;  %v823_v12 = vld [vmem:[%s3698_s3 + $0x20] sm:$0xff] }
 0x942   :  { %v2670_v17 = vpop.eup %2669 }
 0x943   :  { %v1284_v23 = vmul.f32 %v2670_v17, %v2668_v11  ;;  %v2672_v40 = vpop.eup %2671  ;;  %v1283_v3 = vmul.f32 %v2670_v17, %v1281_v4 }
 0x944   :  { %v1276_v24 = vadd.f32 1.0, %v2672_v40  ;;  %v1423_v40 = vsub.f32 1.0, %v823_v12 }
 0x945   :  { %1286 = vrot.lane.b32.xlu0 %v1284_v23, %s2768_s8 }
 0x946   :  { %2673 = vrcp.f32 %v1276_v24 }
 0x953   :  { %v2674_v18 = vpop.eup %2673 }
 0x9b7   :  { %v1287_v25 = vpop.permute.xlu0 %1286 }
 0x9b8   :  { %v1289_v26 = vadd.f32 %v1287_v25, %v1283_v3 }
 0x9ba   :  { %2675 = vtanh.f32 %v1289_v26  ;;  %1298 = vrot.lane.b32.xlu0 %v1289_v26, %s2768_s8 }
 0x9c7   :  { %v2676_v27 = vpop.eup %2675 }
 0x9c8   :  { %v1291_v30 = vmul.f32 %v2676_v27, %v2674_v18 }
 0x9ca   :  { %1293 = vrot.lane.b32.xlu1 %v1291_v30, %s2768_s8 }
 0xa2c   :  { %v1299_v31 = vpop.permute.xlu0 %1298 }
 0xa2d   :  { %v1301_v37 = vmul.f32 %v1299_v31, %v822_v35 }
 0xa2f   :  { %v1304_v39 = vadd.f32 %v1303_v36, %v1301_v37  ;;  %v824_v36 = vld [vmem:[%s3698_s3 + $0x28] sm:$0xff] }
 0xa30   :  { %v1544_v37 = vsub.f32 1.0, %v824_v36 }
 0xa31   :  { %1401 = vrot.lane.b32.xlu1 %v1304_v39, %s2768_s8  ;;  %v1424_v24 = vmul.f32 %v1423_v40, %v1304_v39 }
 0xa3c   :  { %v1294_v13 = vpop.permute.xlu1 %1293 }
 0xa3d   :  { %v1296_v38 = vmul.f32 %v1294_v13, %v822_v35 }
 0xa3f   :  { %v1306_v6 = vadd.f32 %v1305_v28, %v1296_v38  ;;  %1307 = vst.msk [vmem:[#allocation2 + $0x18] sm:$0xff] %vm942_vm1, %v1296_v38 }
 0xa40   :  { %1308 = vst.msk [vmem:[#allocation2 + $0x20] sm:$0xff] %vm944_vm2, %v1296_v38 }
 0xa41   :  { %2421 = vmatmul.mubr.msk.f32.vlgmr.msra.gmra.mxu1 %vm829_vm3, %v1306_v6  ;;  %v1426_v18 = vmul.f32 %v1423_v40, %v1306_v6  ;;  %v825_v40 = vld [vmem:[%s3698_s3 + $0x30] sm:$0xff] }
 0xa42   :  { %1573 = vmatpush1.msra.mxu1 %v3032_v43  ;;  %1620 = vmatprep.mubr.f32.mxu1 %v2760_v14 }
 0xa43   :  { %1574 = vmatprep.subr.mxu1 %v3039_v44 }
 0xa44   :  { %1575 = vmatpush1.msra.mxu1 %v3047_v45 }
 0xa45   :  { %1576 = vmatprep.subr.mxu1 %v3054_v46 }
 0xa46   :  { %1577 = vmatpush1.msra.mxu1 %v3062_v47 }
 0xa47   :  { %1578 = vmatprep.subr.mxu1 %v3069_v48 }
 0xa48   :  { %1579 = vmatpush1.msra.mxu1 %v3076_v49 }
 0xa49   :  { %1580 = vmatprep.subr.mxu1 %v3082_v50 }
 0xa4a   :  { %1581 = vmatpush1.msra.mxu1 %v3089_v51 }
 0xa4b   :  { %1582 = vmatprep.subr.mxu1 %v3100_v54 }
 0xa4c   :  { %1583 = vmatpush1.msra.mxu1 %v3108_v55 }
 0xa4d   :  { %1584 = vmatprep.subr.mxu1 %v3118_v57 }
 0xa4e   :  { %1585 = vmatpush1.msra.mxu1 %v3126_v58 }
 0xa4f   :  { %1586 = vmatprep.subr.mxu1 %v3136_v60 }
 0xa50   :  { %1587 = vmatpush1.msra.mxu1 %v3144_v61 }
 0xaa3   :  { %v1402_v9 = vpop.permute.xlu1 %1401 }
 0xb01   :  { %v1380_v1 = vpop.f32.mrf.mxu1 }
 0xb02   :  { %v1385_v42 = vadd.f32 %v1380_v1, %v3232_v5 }
 0xb03   :  { %v1382_v10 = vpop.f32.mrf.mxu1 }
 0xb04   :  { %v2422_v52 = vmul.f32 -1.442695, %v1385_v42  ;;  %v1386_v19 = vadd.f32 %v1382_v10, %v3238_v22 }
 0xb06   :  { %2677 = vpow2.f32 %v2422_v52  ;;  %v2423_v32 = vmul.f32 -1.442695, %v1386_v19 }
 0xb07   :  { %2679 = vtanh.f32 %v1386_v19 }
 0xb13   :  { %v2678_v53 = vpop.eup %2677 }
 0xb14   :  { %v1390_v56 = vadd.f32 1.0, %v2678_v53  ;;  %v2680_v59 = vpop.eup %2679 }
 0xb16   :  { %2681 = vrcp.f32 %v1390_v56 }
 0xb17   :  { %2683 = vpow2.f32 %v2423_v32 }
 0xb23   :  { %v2682_v62 = vpop.eup %2681 }
 0xb24   :  { %v1405_v63 = vmul.f32 %v2682_v62, %v2680_v59  ;;  %v2684_v33 = vpop.eup %2683  ;;  %v1404_v5 = vmul.f32 %v2682_v62, %v1402_v9 }
 0xb25   :  { %v1397_v8 = vadd.f32 1.0, %v2684_v33 }
 0xb26   :  { %1407 = vrot.lane.b32.xlu0 %v1405_v63, %s2768_s8 }
 0xb27   :  { %2685 = vrcp.f32 %v1397_v8 }
 0xb34   :  { %v2686_v22 = vpop.eup %2685 }
 0xb98   :  { %v1408_v20 = vpop.permute.xlu0 %1407 }
 0xb99   :  { %v1410_v11 = vadd.f32 %v1408_v20, %v1404_v5 }
 0xb9b   :  { %2687 = vtanh.f32 %v1410_v11  ;;  %1419 = vrot.lane.b32.xlu0 %v1410_v11, %s2768_s8 }
 0xba8   :  { %v2688_v17 = vpop.eup %2687 }
 0xba9   :  { %v1412_v23 = vmul.f32 %v2688_v17, %v2686_v22 }
 0xbab   :  { %1414 = vrot.lane.b32.xlu1 %v1412_v23, %s2768_s8 }
 0xc0d   :  { %v1420_v4 = vpop.permute.xlu0 %1419 }
 0xc0e   :  { %v1422_v3 = vmul.f32 %v1420_v4, %v823_v12  ;;  %v1665_v4 = vsub.f32 1.0, %v825_v40 }
 0xc10   :  { %v1425_v25 = vadd.f32 %v1424_v24, %v1422_v3 }
 0xc12   :  { %1522 = vrot.lane.b32.xlu1 %v1425_v25, %s2768_s8  ;;  %v1545_v13 = vmul.f32 %v1544_v37, %v1425_v25 }
 0xc1d   :  { %v1415_v26 = vpop.permute.xlu1 %1414 }
 0xc1e   :  { %v1417_v27 = vmul.f32 %v1415_v26, %v823_v12 }
 0xc20   :  { %v1427_v30 = vadd.f32 %v1426_v18, %v1417_v27  ;;  %1428 = vst.msk [vmem:[#allocation2 + $0x20] sm:$0xff] %vm942_vm1, %v1417_v27 }
 0xc21   :  { %1429 = vst.msk [vmem:[#allocation2 + $0x18] sm:$0xff] %vm944_vm2, %v1417_v27 }
 0xc22   :  { %2424 = vmatmul.mubr.msk.f32.vlgmr.msra.gmra.mxu0 %vm829_vm3, %v1427_v30  ;;  %v1547_v1 = vmul.f32 %v1544_v37, %v1427_v30  ;;  %v1793_v37 = vld [vmem:[%s3699_s10 + $0x10] sm:$0xff] }
 0xc23   :  { %1694 = vmatpush1.msra.mxu0 %v3032_v43  ;;  %1741 = vmatprep.mubr.f32.mxu0 %v2760_v14 }
 0xc24   :  { %1695 = vmatprep.subr.mxu0 %v3039_v44 }
 0xc25   :  { %1696 = vmatpush1.msra.mxu0 %v3047_v45 }
 0xc26   :  { %1697 = vmatprep.subr.mxu0 %v3054_v46 }
 0xc27   :  { %1698 = vmatpush1.msra.mxu0 %v3062_v47 }
 0xc28   :  { %1699 = vmatprep.subr.mxu0 %v3069_v48 }
 0xc29   :  { %1700 = vmatpush1.msra.mxu0 %v3076_v49 }
 0xc2a   :  { %1701 = vmatprep.subr.mxu0 %v3082_v50 }
 0xc2b   :  { %1702 = vmatpush1.msra.mxu0 %v3089_v51 }
 0xc2c   :  { %1703 = vmatprep.subr.mxu0 %v3100_v54 }
 0xc2d   :  { %1704 = vmatpush1.msra.mxu0 %v3108_v55 }
 0xc2e   :  { %1705 = vmatprep.subr.mxu0 %v3118_v57 }
 0xc2f   :  { %1706 = vmatpush1.msra.mxu0 %v3126_v58 }
 0xc30   :  { %1707 = vmatprep.subr.mxu0 %v3136_v60 }
 0xc31   :  { %1708 = vmatpush1.msra.mxu0 %v3144_v61 }
 0xc32   :  { %2573 = vmatprep.subr.mxu0 %v2760_v14 }
 0xc84   :  { %v1523_v58 = vpop.permute.xlu1 %1522 }
 0xce2   :  { %v1501_v43 = vpop.f32.mrf.mxu0 }
 0xce3   :  { %v1506_v44 = vadd.f32 %v1501_v43, %v3244_v34 }
 0xce4   :  { %v1503_v46 = vpop.f32.mrf.mxu0 }
 0xce5   :  { %v2425_v45 = vmul.f32 -1.442695, %v1506_v44  ;;  %v1507_v47 = vadd.f32 %v1503_v46, %v3250_v41 }
 0xce7   :  { %2689 = vpow2.f32 %v2425_v45  ;;  %v2426_v55 = vmul.f32 -1.442695, %v1507_v47 }
 0xce8   :  { %2691 = vtanh.f32 %v1507_v47 }
 0xcf4   :  { %v2690_v48 = vpop.eup %2689 }
 0xcf5   :  { %v1511_v49 = vadd.f32 1.0, %v2690_v48  ;;  %v2692_v50 = vpop.eup %2691 }
 0xcf7   :  { %2693 = vrcp.f32 %v1511_v49 }
 0xcf8   :  { %2695 = vpow2.f32 %v2426_v55 }
 0xd04   :  { %v2694_v51 = vpop.eup %2693 }
 0xd05   :  { %v1526_v54 = vmul.f32 %v2694_v51, %v2692_v50  ;;  %v2696_v57 = vpop.eup %2695  ;;  %v1525_v61 = vmul.f32 %v2694_v51, %v1523_v58 }
 0xd06   :  { %v1518_v60 = vadd.f32 1.0, %v2696_v57  ;;  %v1798_v57 = vld [vmem:[%s3699_s10 + $0x38] sm:$0xff] }
 0xd07   :  { %1528 = vrot.lane.b32.xlu0 %v1526_v54, %s2768_s8  ;;  %2545 = vmatprep.subr.mxu1 %v1798_v57 }
 0xd08   :  { %2697 = vrcp.f32 %v1518_v60 }
 0xd15   :  { %v2698_v41 = vpop.eup %2697 }
 0xd79   :  { %v1529_v34 = vpop.permute.xlu0 %1528 }
 0xd7a   :  { %v1531_v35 = vadd.f32 %v1529_v34, %v1525_v61 }
 0xd7c   :  { %2699 = vtanh.f32 %v1531_v35  ;;  %1540 = vrot.lane.b32.xlu0 %v1531_v35, %s2768_s8 }
 0xd89   :  { %v2700_v15 = vpop.eup %2699 }
 0xd8a   :  { %v1533_v31 = vmul.f32 %v2700_v15, %v2698_v41 }
 0xd8c   :  { %1535 = vrot.lane.b32.xlu1 %v1533_v31, %s2768_s8  ;;  %v1795_v31 = vld [vmem:[%s3699_s10 + $0x20] sm:$0xff] }
 0xdee   :  { %v1541_v39 = vpop.permute.xlu0 %1540 }
 0xdef   :  { %v1543_v28 = vmul.f32 %v1541_v39, %v824_v36  ;;  %v1792_v39 = vld [vmem:[%s3699_s10 + $0x8] sm:$0xff] }
 0xdf1   :  { %v1546_v38 = vadd.f32 %v1545_v13, %v1543_v28  ;;  %v1791_v13 = vld [vmem:[%s3699_s10] sm:$0xff] }
 0xdf3   :  { %1643 = vrot.lane.b32.xlu1 %v1546_v38, %s2768_s8  ;;  %v1666_v3 = vmul.f32 %v1665_v4, %v1546_v38 }
 0xdfe   :  { %v1536_v6 = vpop.permute.xlu1 %1535 }
 0xdff   :  { %v1538_v42 = vmul.f32 %v1536_v6, %v824_v36  ;;  %v1794_v36 = vld [vmem:[%s3699_s10 + $0x18] sm:$0xff] }
 0xe01   :  { %v1548_v52 = vadd.f32 %v1547_v1, %v1538_v42  ;;  %1549 = vst.msk [vmem:[#allocation2 + $0x28] sm:$0xff] %vm942_vm1, %v1538_v42  ;;  %v826_v1 = vld [vmem:[%s3698_s3 + $0x38] sm:$0xff] }
 0xe02   :  { %1550 = vst.msk [vmem:[#allocation2 + $0x10] sm:$0xff] %vm944_vm2, %v1538_v42 }
 0xe03   :  { %2427 = vmatmul.mubr.msk.f32.vlgmr.msra.gmra.mxu1 %vm829_vm3, %v1548_v52  ;;  %v1668_v27 = vmul.f32 %v1665_v4, %v1548_v52 }
 0xe04   :  { %2546 = vmatpush3.msra.mxu1 %v1798_v57 }
 0xe65   :  { %v1644_v20 = vpop.permute.xlu1 %1643 }
 0xec3   :  { %v1622_v10 = vpop.f32.mrf.mxu1 }
 0xec4   :  { %v1627_v19 = vadd.f32 %v1622_v10, %v3256_v29 }
 0xec5   :  { %v1624_v56 = vpop.f32.mrf.mxu1 }
 0xec6   :  { %v2428_v53 = vmul.f32 -1.442695, %v1627_v19  ;;  %v1628_v59 = vadd.f32 %v1624_v56, %v3264_v2  ;;  %v3488_v56 = vld [vmem:[#allocation2 + $0x18] sm:$0xff] }
 0xec8   :  { %2701 = vpow2.f32 %v2428_v53  ;;  %v2429_v8 = vmul.f32 -1.442695, %v1628_v59  ;;  %v3484_v53 = vld [vmem:[#allocation2 + $0x10] sm:$0xff] }
 0xec9   :  { %2703 = vtanh.f32 %v1628_v59  ;;  %v3492_v59 = vld [vmem:[#allocation2 + $0x20] sm:$0xff] }
 0xed5   :  { %v2702_v62 = vpop.eup %2701 }
 0xed6   :  { %v1632_v63 = vadd.f32 1.0, %v2702_v62  ;;  %v2704_v32 = vpop.eup %2703  ;;  %v3496_v62 = vld [vmem:[#allocation2 + $0x28] sm:$0xff] }
 0xed8   :  { %2705 = vrcp.f32 %v1632_v63 }
 0xed9   :  { %2707 = vpow2.f32 %v2429_v8 }
 0xee5   :  { %v2706_v33 = vpop.eup %2705 }
 0xee6   :  { %v1647_v9 = vmul.f32 %v2706_v33, %v2704_v32  ;;  %v2708_v5 = vpop.eup %2707  ;;  %v1646_v29 = vmul.f32 %v2706_v33, %v1644_v20  ;;  %v21_v33 = vstv %s3700_s13 }
 0xee7   :  { %v1639_v11 = vadd.f32 1.0, %v2708_v5  ;;  %22 = vst [vmem:[#allocation3] sm:$0x1] %v21_v33 }
 0xee8   :  { %1649 = vrot.lane.b32.xlu0 %v1647_v9, %s2768_s8  ;;  %v2433_v9 = vld [vmem:[%s3701_s11] ss:$0 sm:$0xff] }
 0xee9   :  { %2709 = vrcp.f32 %v1639_v11 }
 0xef6   :  { %v2710_v2 = vpop.eup %2709 }
 0xf5a   :  { %v1650_v22 = vpop.permute.xlu0 %1649 }
 0xf5b   :  { %v1652_v17 = vadd.f32 %v1650_v22, %v1646_v29 }
 0xf5d   :  { %2711 = vtanh.f32 %v1652_v17  ;;  %1661 = vrot.lane.b32.xlu0 %v1652_v17, %s2768_s8 }
 0xf6a   :  { %v2712_v23 = vpop.eup %2711 }
 0xf6b   :  { %v1654_v12 = vmul.f32 %v2712_v23, %v2710_v2 }
 0xf6d   :  { %1656 = vrot.lane.b32.xlu1 %v1654_v12, %s2768_s8 }
 0xfcf   :  { %v1662_v24 = vpop.permute.xlu0 %1661 }
 0xfd0   :  { %v1664_v25 = vmul.f32 %v1662_v24, %v825_v40 }
 0xfd2   :  { %v1667_v26 = vadd.f32 %v1666_v3, %v1664_v25 }
 0xfd4   :  { %1764 = vrot.lane.b32.xlu1 %v1667_v26, %s2768_s8  ;;  %v2442_v26 = vld [vmem:[%s3702_s12] ss:$0 sm:$0xff] }
 0xfdf   :  { %v1657_v18 = vpop.permute.xlu1 %1656 }
 0xfe0   :  { %v1659_v30 = vmul.f32 %v1657_v18, %v825_v40 }
 0xfe2   :  { %v1669_v43 = vadd.f32 %v1668_v27, %v1659_v30  ;;  %1670 = vst.msk [vmem:[#allocation2 + $0x30] sm:$0xff] %vm942_vm1, %v1659_v30 }
 0xfe3   :  { %1671 = vst.msk [vmem:[#allocation2 + $0x8] sm:$0xff] %vm944_vm2, %v1659_v30 }
 0xfe4   :  { %2430 = vmatmul.mubr.msk.f32.vlgmr.msra.gmra.mxu0 %vm829_vm3, %v1669_v43 }
 0xfe5   :  { %2589 = vmatprep.mubr.msk.f32.mxu0 %vm2769_vm13, %v2760_v14 }
 0xfe9   :  { %v3500_v63 = vld [vmem:[#allocation2 + $0x30] sm:$0xff] }
 0xfea   :  { %v3480_v19 = vld [vmem:[#allocation2 + $0x8] sm:$0xff] }
0x1046   :  { %v1765_v61 = vpop.permute.xlu1 %1764 }
0x10a4   :  { %v1743_v44 = vpop.f32.mrf.mxu0 }
0x10a5   :  { %v1748_v45 = vadd.f32 %v1743_v44, %v3268_v21  ;;  %v1797_v21 = vld [vmem:[%s3699_s10 + $0x30] sm:$0xff] }
0x10a6   :  { %v1745_v47 = vpop.f32.mrf.mxu0  ;;  %2547 = vmatprep.subr.mxu1 %v1797_v21 }
0x10a7   :  { %v2431_v46 = vmul.f32 -1.442695, %v1748_v45  ;;  %v1749_v48 = vadd.f32 %v1745_v47, %v3271_v7  ;;  %v1796_v7 = vld [vmem:[%s3699_s10 + $0x28] sm:$0xff]  ;;  %2548 = vmatpush3.msra.mxu1 %v1797_v21 }
0x10a8   :  { %2549 = vmatprep.subr.mxu1 %v1796_v7 }
0x10a9   :  { %2713 = vpow2.f32 %v2431_v46  ;;  %2550 = vmatpush3.msra.mxu1 %v1796_v7  ;;  %v2432_v58 = vmul.f32 -1.442695, %v1749_v48 }
0x10aa   :  { %2715 = vtanh.f32 %v1749_v48  ;;  %2551 = vmatprep.subr.mxu1 %v1795_v31 }
0x10ab   :  { %2552 = vmatpush3.msra.mxu1 %v1795_v31 }
0x10ac   :  { %2553 = vmatprep.subr.mxu1 %v1794_v36 }
0x10ad   :  { %2554 = vmatpush3.msra.mxu1 %v1794_v36 }
0x10ae   :  { %2555 = vmatprep.subr.mxu1 %v1793_v37 }
0x10af   :  { %2556 = vmatpush3.msra.mxu1 %v1793_v37 }
0x10b0   :  { %2557 = vmatprep.subr.mxu1 %v1792_v39 }
0x10b1   :  { %2558 = vmatpush3.msra.mxu1 %v1792_v39 }
0x10b2   :  { %2559 = vmatprep.subr.mxu1 %v1791_v13 }
0x10b3   :  { %2560 = vmatpush3.msra.mxu1 %v1791_v13  ;;  %v2443_v13 = vld [vmem:[#allocation3] ss:$0 sm:$0xff] }
0x10b4   :  { %2592 = vmatprep.subr.mxu1 %v2760_v14 }
0x10b6   :  { %v2714_v49 = vpop.eup %2713 }
0x10b7   :  { %v1753_v50 = vadd.f32 1.0, %v2714_v49  ;;  %v2716_v51 = vpop.eup %2715 }
0x10b9   :  { %2717 = vrcp.f32 %v1753_v50 }
0x10ba   :  { %2719 = vpow2.f32 %v2432_v58 }
0x10c6   :  { %v2718_v54 = vpop.eup %2717 }
0x10c7   :  { %v1768_v55 = vmul.f32 %v2718_v54, %v2716_v51  ;;  %v2720_v60 = vpop.eup %2719  ;;  %v1767_v35 = vmul.f32 %v2718_v54, %v1765_v61 }
0x10c8   :  { %v1760_v34 = vadd.f32 1.0, %v2720_v60 }
0x10c9   :  { %1770 = vrot.lane.b32.xlu0 %v1768_v55, %s2768_s8 }
0x10ca   :  { %2721 = vrcp.f32 %v1760_v34 }
0x10d7   :  { %v2722_v28 = vpop.eup %2721 }
0x113b   :  { %v1771_v41 = vpop.permute.xlu0 %1770 }
0x113c   :  { %v1773_v15 = vadd.f32 %v1771_v41, %v1767_v35 }
0x113e   :  { %2723 = vtanh.f32 %v1773_v15 }
0x114b   :  { %v2724_v38 = vpop.eup %2723 }
0x114c   :  { %v1775_v6 = vmul.f32 %v2724_v38, %v2722_v28  ;;  %v3528_v28 = vld [vmem:[%s3703_s4 + $0x8] sm:$0xff] }
0x114d   :  { %vm2006_vm4 = vcmp.gt.f32.partialorder %v3528_v28, 0.5 }
0x114e   :  { %1777 = vrot.lane.b32.xlu1 %v1775_v6, %s2768_s8 }
0x11c0   :  { %v1778_v42 = vpop.permute.xlu1 %1777 }
0x11c1   :  { %v1780_v52 = vmul.f32 %v1778_v42, %v826_v1  ;;  %v3533_v1 = vld [vmem:[%s3703_s4 + $0x20] sm:$0xff]  ;;  %v3538_v42 = vld [vmem:[%s3703_s4 + $0x28] sm:$0xff] }
0x11c2   :  { %vm2009_vm6 = vcmp.gt.f32.partialorder %v3533_v1, 0.5  ;;  %vm2010_vm7 = vcmp.gt.f32.partialorder %v3538_v42, 0.5 }
0x11c3   :  { %1781 = vst.msk [vmem:[#allocation2 + $0x38] sm:$0xff] %vm942_vm1, %v1780_v52 }
0x11c4   :  { %1782 = vst.msk [vmem:[#allocation2] sm:$0xff] %vm944_vm2, %v1780_v52  ;;  %v3543_v52 = vld [vmem:[%s3703_s4 + $0x30] sm:$0xff] }
0x11c5   :  { %vm2011_vm8 = vcmp.gt.f32.partialorder %v3543_v52, 0.5 }
0x11ca   :  { %v3504_v32 = vld [vmem:[#allocation2 + $0x38] sm:$0xff] }
0x11cb   :  { %v3476_v10 = vld [vmem:[#allocation2] sm:$0xff] }
0x11cc   :  { %2561 = vmatprep.mubr.msk.f32.mxu1 %vm829_vm3, %v3476_v10 }
0x11cd   :  { %2562 = vmatmul.mubr.msk.f32.vlgmr.msra.gmra.mxu1 %vm829_vm3, %v3480_v19 }
0x11ce   :  { %2564 = vmatprep.mubr.msk.f32.mxu1 %vm829_vm3, %v3484_v53 }
0x11d1   :  { %2565 = vmatmul.mubr.msk.f32.gmra.mxu1 %vm829_vm3, %v3488_v56 }
0x11d2   :  { %2567 = vmatprep.mubr.msk.f32.mxu1 %vm829_vm3, %v3492_v59 }
0x11d5   :  { %2568 = vmatmul.mubr.msk.f32.gmra.mxu1 %vm829_vm3, %v3496_v62 }
0x11d6   :  { %2570 = vmatprep.mubr.msk.f32.mxu1 %vm829_vm3, %v3500_v63 }
0x11d9   :  { %2571 = vmatmul.mubr.msk.f32.gmra.mxu1 %vm829_vm3, %v3504_v32 }
0x11da   :  { %2608 = vmatprep.mubr.msk.f32.mxu1 %vm2769_vm13, %v2760_v14 }
0x128d   :  { %v2563_v8 = vpop.f32.mrf.mxu1 }
0x128e   :  { %v1902_v5 = vadd.f32 %v2563_v8, %v2433_v9  ;;  %v3554_v8 = vld [vmem:[%s3703_s4 + $0x18] sm:$0xff] }
0x128f   :  { %v1896_v20 = vpop.f32.mrf.mxu1  ;;  %vm2008_vm10 = vcmp.gt.f32.partialorder %v3554_v8, 0.5 }
0x1290   :  { %2725 = vtanh.f32 %v1902_v5  ;;  %v1897_v11 = vadd.f32 %v2433_v9, %v1896_v20  ;;  %v3559_v20 = vld [vmem:[%s3703_s4 + $0x10] sm:$0xff] }
0x1291   :  { %v2566_v29 = vpop.f32.mrf.mxu1  ;;  %vm2007_vm11 = vcmp.gt.f32.partialorder %v3559_v20, 0.5 }
0x1292   :  { %2727 = vtanh.f32 %v1897_v11  ;;  %v1912_v22 = vadd.f32 %v2566_v29, %v2433_v9 }
0x1293   :  { %v1906_v17 = vpop.f32.mrf.mxu1 }
0x1294   :  { %2729 = vtanh.f32 %v1912_v22  ;;  %v1907_v2 = vadd.f32 %v2433_v9, %v1906_v17 }
0x1295   :  { %v2569_v23 = vpop.f32.mrf.mxu1 }
0x1296   :  { %2731 = vtanh.f32 %v1907_v2  ;;  %v1922_v12 = vadd.f32 %v2569_v23, %v2433_v9 }
0x1297   :  { %v1916_v40 = vpop.f32.mrf.mxu1 }
0x1298   :  { %v1917_v4 = vadd.f32 %v2433_v9, %v1916_v40  ;;  %2733 = vtanh.f32 %v1922_v12  ;;  %v3567_v40 = vld [vmem:[%s3703_s4 + $0x38] sm:$0xff] }
0x1299   :  { %v2572_v24 = vpop.f32.mrf.mxu1  ;;  %vm2012_vm12 = vcmp.gt.f32.partialorder %v3567_v40, 0.5 }
0x129a   :  { %2735 = vtanh.f32 %v1917_v4  ;;  %v1932_v3 = vadd.f32 %v2572_v24, %v2433_v9 }
0x129b   :  { %v1926_v25 = vpop.f32.mrf.mxu1 }
0x129c   :  { %v1927_v18 = vadd.f32 %v2433_v9, %v1926_v25  ;;  %2737 = vtanh.f32 %v1932_v3  ;;  %v3549_v9 = vld [vmem:[%s3703_s4] sm:$0xff] }
0x129d   :  { %v2726_v27 = vpop.eup %2725  ;;  %vm2005_vm9 = vcmp.gt.f32.partialorder %v3549_v9, 0.5 }
0x129e   :  { %2739 = vtanh.f32 %v1927_v18  ;;  %v1951_v30 = vmul.f32 %v2726_v27, %v2442_v26 }
0x129f   :  { %v2728_v43 = vpop.eup %2727 }
0x12a0   :  { %v1961_v44 = vsel %vm942_vm1, %v1951_v30, 0.0  ;;  %v1950_v45 = vmul.f32 %v2728_v43, %v2442_v26 }
0x12a1   :  { %v2730_v46 = vpop.eup %2729  ;;  %1962 = vadd.xlane.f32.xlu1 %v1961_v44 }
0x12a2   :  { %v1958_v47 = vsel %vm942_vm1, %v1950_v45, 0.0  ;;  %v1953_v48 = vmul.f32 %v2730_v46, %v2442_v26 }
0x12a3   :  { %v2732_v49 = vpop.eup %2731  ;;  %1959 = vadd.xlane.f32.xlu0 %v1958_v47 }
0x12a4   :  { %v1967_v51 = vsel %vm942_vm1, %v1953_v48, 0.0  ;;  %v1952_v54 = vmul.f32 %v2732_v49, %v2442_v26 }
0x12a5   :  { %v2734_v50 = vpop.eup %2733 }
0x12a6   :  { %v1964_v58 = vsel %vm942_vm1, %v1952_v54, 0.0  ;;  %v1955_v60 = vmul.f32 %v2734_v50, %v2442_v26 }
0x12a7   :  { %v2736_v55 = vpop.eup %2735  ;;  %1968 = vadd.xlane.f32.xlu0 %v1967_v51 }
0x12a8   :  { %v1954_v57 = vmul.f32 %v2736_v55, %v2442_v26  ;;  %v1973_v35 = vsel %vm942_vm1, %v1955_v60, 0.0 }
0x12a9   :  { %v2738_v21 = vpop.eup %2737 }
0x12aa   :  { %v1970_v7 = vsel %vm942_vm1, %v1954_v57, 0.0  ;;  %v1957_v15 = vmul.f32 %v2738_v21, %v2442_v26 }
0x12ab   :  { %v2740_v61 = vpop.eup %2739  ;;  %1971 = vadd.xlane.f32.xlu1 %v1970_v7  ;;  %1965 = vadd.xlane.f32.xlu0 %v1964_v58 }
0x12ac   :  { %v1956_v34 = vmul.f32 %v2740_v61, %v2442_v26  ;;  %v1979_v31 = vsel %vm942_vm1, %v1957_v15, 0.0 }
0x12ae   :  { %v1976_v41 = vsel %vm942_vm1, %v1956_v34, 0.0 }
0x12af   :  { %1974 = vadd.xlane.f32.xlu0 %v1973_v35  ;;  %1977 = vadd.xlane.f32.xlu1 %v1976_v41 }
0x12b3   :  { %1980 = vadd.xlane.f32.xlu0 %v1979_v31 }
0x132a   :  { %v1963_v37 = vpop.xlane.xlu1 %1962 }
0x132b   :  { %v1990_v33 = vadd.f32 %v2443_v13, %v1963_v37 }
0x132c   :  { %v1960_v36 = vpop.xlane.xlu0 %1959 }
0x132d   :  { %v1989_v11 = vadd.f32 %v2443_v13, %v1960_v36  ;;  %v2014_v4 = vsel %vm2006_vm4, %v1990_v33, -1e+30 }
0x132e   :  { %v2023_v45 = vsel %vm2021_vm5, %v2014_v4, -inf }
0x132f   :  { %v2013_v27 = vsel %vm2005_vm9, %v1989_v11, -1e+30 }
0x1330   :  { %v1969_v39 = vpop.xlane.xlu0 %1968  ;;  %v2022_v50 = vsel %vm2021_vm5, %v2013_v27, -inf }
0x1331   :  { %v1992_v17 = vadd.f32 %v2443_v13, %v1969_v39 }
0x1333   :  { %v2016_v30 = vsel %vm2008_vm10, %v1992_v17, -1e+30 }
0x1334   :  { %v1972_v38 = vpop.xlane.xlu1 %1971  ;;  %v1966_v6 = vpop.xlane.xlu0 %1965  ;;  %v2025_v51 = vsel %vm2021_vm5, %v2016_v30, -inf }
0x1335   :  { %v1993_v5 = vadd.f32 %v2443_v13, %v1972_v38  ;;  %v1991_v2 = vadd.f32 %v2443_v13, %v1966_v6 }
0x1337   :  { %v2017_v24 = vsel %vm2009_vm6, %v1993_v5, -1e+30  ;;  %v2015_v43 = vsel %vm2007_vm11, %v1991_v2, -1e+30 }
0x1338   :  { %v1975_v29 = vpop.xlane.xlu0 %1974  ;;  %v1978_v22 = vpop.xlane.xlu1 %1977  ;;  %v2026_v46 = vsel %vm2021_vm5, %v2017_v24, -inf  ;;  %v2024_v54 = vsel %vm2021_vm5, %v2015_v43, -inf }
0x1339   :  { %v1994_v23 = vadd.f32 %v2443_v13, %v1975_v29  ;;  %v1995_v12 = vadd.f32 %v2443_v13, %v1978_v22  ;;  %v2027_v57 = vmax.f32 %v2022_v50, %v2026_v46 }
0x133b   :  { %v2018_v3 = vsel %vm2010_vm7, %v1994_v23, -1e+30  ;;  %v2019_v25 = vsel %vm2011_vm8, %v1995_v12, -1e+30 }
0x133c   :  { %v2028_v26 = vsel %vm2021_vm5, %v2018_v3, -inf  ;;  %v1981_v18 = vpop.xlane.xlu0 %1980  ;;  %v2030_v47 = vsel %vm2021_vm5, %v2019_v25, -inf }
0x133d   :  { %v1996_v44 = vadd.f32 %v2443_v13, %v1981_v18  ;;  %v2029_v48 = vmax.f32 %v2023_v45, %v2028_v26  ;;  %v2031_v21 = vmax.f32 %v2024_v54, %v2030_v47 }
0x133f   :  { %v2020_v49 = vsel %vm2012_vm12, %v1996_v44, -1e+30  ;;  %v2034_v58 = vmax.f32 %v2027_v57, %v2029_v48 }
0x1340   :  { %v2032_v55 = vsel %vm2021_vm5, %v2020_v49, -inf }
0x1341   :  { %v2033_v7 = vmax.f32 %v2025_v51, %v2032_v55 }
0x1343   :  { %v2035_v60 = vmax.f32 %v2031_v21, %v2033_v7 }
0x1345   :  { %v2036_v61 = vmax.f32 %v2034_v58, %v2035_v60 }
0x1347   :  { %2037 = vmax.xlane.f32.xlu1 %v2036_v61 }
0x13d0   :  { %v2038_v34 = vpop.xlane.xlu1 %2037 }
0x13d1   :  { %v2039_v35 = vrot.slane %v2038_v34, 4 }
0x13d3   :  { %v2040_v41 = vmax.f32 %v2038_v34, %v2039_v35 }
0x13d5   :  { %v2041_v15 = vrot.slane %v2040_v41, 2 }
0x13d7   :  { %v2042_v31 = vmax.f32 %v2040_v41, %v2041_v15 }
0x13d9   :  { %v2043_v36 = vrot.slane %v2042_v31, 1 }
0x13db   :  { %v2044_v37 = vmax.f32 %v2042_v31, %v2043_v36 }
0x13dd   :  { %2611 = vpush %v2044_v37 }
0x140e   :  { %s2612_s4 = spop %2611 }
0x140f   :  { %v2046_v39 = vstv %s2612_s4 }
0x1410   :  { %v2051_v13 = vsub.f32 %v2017_v24, %v2046_v39  ;;  %v2052_v38 = vsub.f32 %v2018_v3, %v2046_v39  ;;  %v2053_v6 = vsub.f32 %v2019_v25, %v2046_v39  ;;  %v2054_v33 = vsub.f32 %v2020_v49, %v2046_v39 }
0x1411   :  { %v2050_v5 = vsub.f32 %v2016_v30, %v2046_v39  ;;  %v2049_v2 = vsub.f32 %v2015_v43, %v2046_v39  ;;  %v2048_v12 = vsub.f32 %v2014_v4, %v2046_v39  ;;  %v2047_v18 = vsub.f32 %v2013_v27, %v2046_v39 }
0x1412   :  { %v2069_v11 = vmul.f32 1.442695, %v2054_v33  ;;  %v2067_v29 = vmul.f32 1.442695, %v2053_v6  ;;  %v2065_v22 = vmul.f32 1.442695, %v2052_v38 }
0x1413   :  { %v2063_v17 = vmul.f32 1.442695, %v2051_v13  ;;  %v2061_v23 = vmul.f32 1.442695, %v2050_v5  ;;  %v2059_v26 = vmul.f32 1.442695, %v2049_v2 }
0x1414   :  { %2741 = vpow2.f32 %v2069_v11  ;;  %v2057_v24 = vmul.f32 1.442695, %v2048_v12  ;;  %v2055_v44 = vmul.f32 1.442695, %v2047_v18  ;;  %v2263_v2 = vld [vmem:[%s3704_s14 + $0x30] sm:$0xff]  ;;  %v2261_v12 = vld [vmem:[%s3704_s14 + $0x20] sm:$0xff] }
0x1415   :  { %2743 = vpow2.f32 %v2067_v29  ;;  %v2259_v18 = vld [vmem:[%s3704_s14 + $0x10] sm:$0xff] }
0x1416   :  { %2745 = vpow2.f32 %v2065_v22 }
0x1417   :  { %2747 = vpow2.f32 %v2063_v17  ;;  %v2264_v17 = vld [vmem:[%s3704_s14 + $0x38] sm:$0xff] }
0x1418   :  { %2749 = vpow2.f32 %v2061_v23  ;;  %2593 = vmatpush3.msra.mxu1 %v2264_v17  ;;  %v2262_v23 = vld [vmem:[%s3704_s14 + $0x28] sm:$0xff] }
0x1419   :  { %2751 = vpow2.f32 %v2059_v26  ;;  %2594 = vmatprep.subr.mxu1 %v2760_v14  ;;  %v2260_v26 = vld [vmem:[%s3704_s14 + $0x18] sm:$0xff] }
0x141a   :  { %2753 = vpow2.f32 %v2057_v24  ;;  %2595 = vmatpush3.msra.mxu1 %v2263_v2  ;;  %v2258_v24 = vld [vmem:[%s3704_s14 + $0x8] sm:$0xff] }
0x141b   :  { %2755 = vpow2.f32 %v2055_v44  ;;  %2596 = vmatprep.subr.mxu1 %v2760_v14 }
0x141c   :  { %2597 = vmatpush3.msra.mxu1 %v2262_v23 }
0x141d   :  { %2598 = vmatprep.subr.mxu1 %v2760_v14 }
0x141e   :  { %2599 = vmatpush3.msra.mxu1 %v2261_v12 }
0x141f   :  { %2600 = vmatprep.subr.mxu1 %v2760_v14 }
0x1420   :  { %2601 = vmatpush3.msra.mxu1 %v2260_v26 }
0x1421   :  { %v2742_v3 = vpop.eup %2741  ;;  %2602 = vmatprep.subr.mxu1 %v2760_v14 }
0x1422   :  { %v2744_v25 = vpop.eup %2743  ;;  %v2078_v30 = vsel %vm2012_vm12, %v2742_v3, 0.0  ;;  %2603 = vmatpush3.msra.mxu1 %v2259_v18  ;;  %v2257_v3 = vld [vmem:[%s3704_s14] sm:$0xff] }
0x1423   :  { %v2746_v45 = vpop.eup %2745  ;;  %2133 = vperm.xlu0 %2625, %v2078_v30   ;;  %v2077_v43 = vsel %vm2011_vm8, %v2744_v25, 0.0  ;;  %2604 = vmatprep.subr.mxu1 %v2760_v14 }
0x1424   :  { %v2748_v46 = vpop.eup %2747  ;;  %2128 = vperm.xlu1 %2626, %v2077_v43   ;;  %v2076_v47 = vsel %vm2010_vm7, %v2746_v45, 0.0  ;;  %2605 = vmatpush3.msra.mxu1 %v2258_v24  ;;  %v2446_v45 = vld [vmem:[%s3705_s15] ss:$0 sm:$0xff] }
0x1425   :  { %v2075_v4 = vsel %vm2009_vm6, %v2748_v46, 0.0  ;;  %v2750_v27 = vpop.eup %2749  ;;  %2606 = vmatprep.subr.mxu1 %v2760_v14 }
0x1426   :  { %v2074_v40 = vsel %vm2008_vm10, %v2750_v27, 0.0  ;;  %v2752_v48 = vpop.eup %2751  ;;  %2607 = vmatpush3.msra.mxu1 %v2257_v3 }
0x1427   :  { %2118 = vperm.xlu0 %2625, %v2075_v4   ;;  %v2073_v52 = vsel %vm2007_vm11, %v2752_v48, 0.0  ;;  %v2754_v49 = vpop.eup %2753 }
0x1428   :  { %2123 = vperm.xlu1 %2626, %v2076_v47   ;;  %v2072_v1 = vsel %vm2006_vm4, %v2754_v49, 0.0  ;;  %v2756_v42 = vpop.eup %2755 }
0x1429   :  { %v2071_v8 = vsel %vm2005_vm9, %v2756_v42, 0.0 }
0x142b   :  { %2113 = vperm.xlu0 %2625, %v2074_v40  }
0x142c   :  { %2158 = vrot.lane.b32.xlu1 %v2078_v30, %s2768_s8 }
0x142f   :  { %2108 = vperm.xlu0 %2625, %v2073_v52  }
0x1430   :  { %2156 = vrot.lane.b32.xlu1 %v2077_v43, %s2768_s8 }
0x1433   :  { %2103 = vperm.xlu0 %2625, %v2072_v1  }
0x1434   :  { %2154 = vrot.lane.b32.xlu1 %v2076_v47, %s2768_s8 }
0x1437   :  { %2098 = vperm.xlu0 %2625, %v2071_v8  }
0x1438   :  { %2152 = vrot.lane.b32.xlu1 %v2075_v4, %s2768_s8 }
0x143b   :  { %2148 = vrot.lane.b32.xlu0 %v2073_v52, %s2768_s8 }
0x143c   :  { %2150 = vrot.lane.b32.xlu1 %v2074_v40, %s2768_s8 }
0x143f   :  { %2144 = vrot.lane.b32.xlu0 %v2071_v8, %s2768_s8 }
0x1440   :  { %2146 = vrot.lane.b32.xlu1 %v2072_v1, %s2768_s8 }
0x149e   :  { %v2134_v28 = vpop.permute.xlu0 %2133 }
0x149f   :  { %v2129_v20 = vpop.permute.xlu1 %2128  ;;  %v2143_v51 = vmul.f32 %v2134_v28, %v3504_v32 }
0x14a0   :  { %v2142_v21 = vmul.f32 %v2129_v20, %v3500_v63 }
0x14a2   :  { %v2119_v9 = vpop.permute.xlu0 %2118 }
0x14a3   :  { %v2124_v50 = vpop.permute.xlu1 %2123  ;;  %v2140_v41 = vmul.f32 %v2119_v9, %v3492_v59 }
0x14a4   :  { %v2141_v61 = vmul.f32 %v2124_v50, %v3496_v62  ;;  %v2085_v62 = vand.u32 7, %v2901_v16 }
0x14a6   :  { %v2114_v54 = vpop.permute.xlu0 %2113  ;;  %vm2093_vm14 = vcmp.eq.s32.totalorder %v2085_v62, %v3187_v0  ;;  %v2770_v0 = vmov 64  }
0x14a7   :  { %v2159_v55 = vpop.permute.xlu1 %2158  ;;  %v2139_v36 = vmul.f32 %v2114_v54, %v3488_v56  ;;  %2627 = vset.pattern.permute.xlu1 %v2770_v0  ;;  %2628 = vset.pattern.permute.xlu0 %v2770_v0 }
0x14a8   :  { %v2175_v57 = vsel %vm829_vm3, %v2143_v51, %v2159_v55 }
0x14a9   :  { %2574 = vmatpush3.msra.mxu0 %v2175_v57 }
0x14aa   :  { %v2109_v7 = vpop.permute.xlu0 %2108  ;;  %2575 = vmatprep.subr.mxu0 %v2760_v14 }
0x14ab   :  { %v2157_v58 = vpop.permute.xlu1 %2156  ;;  %v2138_v13 = vmul.f32 %v2109_v7, %v3484_v53  ;;  %v2444_v53 = vsel %vm2093_vm14, 1.0, %v2760_v14 }
0x14ac   :  { %v2174_v60 = vsel %vm829_vm3, %v2142_v21, %v2157_v58 }
0x14ad   :  { %2576 = vmatpush3.msra.mxu0 %v2174_v60 }
0x14ae   :  { %v2104_v34 = vpop.permute.xlu0 %2103  ;;  %2577 = vmatprep.subr.mxu0 %v2760_v14 }
0x14af   :  { %v2155_v32 = vpop.permute.xlu1 %2154  ;;  %v2137_v59 = vmul.f32 %v2104_v34, %v3480_v19 }
0x14b0   :  { %v2173_v35 = vsel %vm829_vm3, %v2141_v61, %v2155_v32 }
0x14b1   :  { %2578 = vmatpush3.msra.mxu0 %v2173_v35 }
0x14b2   :  { %v2099_v15 = vpop.permute.xlu0 %2098  ;;  %2579 = vmatprep.subr.mxu0 %v2760_v14 }
0x14b3   :  { %v2153_v63 = vpop.permute.xlu1 %2152  ;;  %v2136_v5 = vmul.f32 %v2099_v15, %v3476_v10 }
0x14b4   :  { %v2172_v31 = vsel %vm829_vm3, %v2140_v41, %v2153_v63 }
0x14b5   :  { %2580 = vmatpush3.msra.mxu0 %v2172_v31 }
0x14b6   :  { %v2149_v37 = vpop.permute.xlu0 %2148  ;;  %2581 = vmatprep.subr.mxu0 %v2760_v14 }
0x14b7   :  { %v2151_v39 = vpop.permute.xlu1 %2150  ;;  %v2170_v6 = vsel %vm829_vm3, %v2138_v13, %v2149_v37 }
0x14b8   :  { %v2171_v38 = vsel %vm829_vm3, %v2139_v36, %v2151_v39 }
0x14b9   :  { %2582 = vmatpush3.msra.mxu0 %v2171_v38 }
0x14ba   :  { %2583 = vmatprep.subr.mxu0 %v2760_v14  ;;  %v2145_v33 = vpop.permute.xlu0 %2144 }
0x14bb   :  { %v2147_v56 = vpop.permute.xlu1 %2146  ;;  %2584 = vmatpush3.msra.mxu0 %v2170_v6  ;;  %v2168_v19 = vsel %vm829_vm3, %v2136_v5, %v2145_v33 }
0x14bc   :  { %v2169_v11 = vsel %vm829_vm3, %v2137_v59, %v2147_v56  ;;  %2585 = vmatprep.subr.mxu0 %v2760_v14 }
0x14bd   :  { %2586 = vmatpush3.msra.mxu0 %v2169_v11 }
0x14be   :  { %2587 = vmatprep.subr.mxu0 %v2760_v14 }
0x14bf   :  { %2588 = vmatpush3.msra.mxu0 %v2168_v19 }
0x14c0   :  { %2590 = vmatmul.mubr.msk.f32.vlgmr.msra.gmra.mxu0 %vm829_vm3, %v2444_v53 }
0x1580   :  { %v2245_v29 = vpop.f32.mrf.mxu0 }
0x1581   :  { %v2249_v22 = vmax.f32 %v2245_v29, 1e-30 }
0x1582   :  { %v2591_v10 = vpop.f32.mrf.mxu0 }
0x1583   :  { %2252 = vperm.xlu1 %2627, %v2249_v22  }
0x15fe   :  { %v2253_v25 = vpop.permute.xlu1 %2252 }
0x15ff   :  { %2757 = vrcp.f32 %v2253_v25 }
0x160c   :  { %v2758_v30 = vpop.eup %2757 }
0x160d   :  { %v2256_v44 = vmul.f32 %v2758_v30, %v2245_v29 }
0x160f   :  { %2609 = vmatmul.mubr.msk.f32.vlgmr.msra.gmra.mxu1 %vm829_vm3, %v2256_v44 }
0x16cf   :  { %v2341_v43 = vpop.f32.mrf.mxu1 }
0x16d0   :  { %v2342_v46 = vadd.f32 %v2446_v45, %v2341_v43 }
0x16d1   :  { %v2610_v4 = vpop.f32.mrf.mxu1 }
0x16d2   :  { %v2346_v27 = vsel %vm2345_vm15, %v2342_v46, -inf }
0x16d3   :  { %2347 = vmax.xlane.f32.xlu0 %v2346_v27 }
0x175c   :  { %v2348_v47 = vpop.xlane.xlu0 %2347 }
0x175d   :  { %vm2349_vm0 = vcmp.ge.f32.partialorder %v2342_v46, %v2348_v47 }
0x175e   :  { %v2350_v14 = vsel %vm2349_vm0, %v2901_v16, 5 }
0x175f   :  { %v2351_v40 = vsel %vm2345_vm15, %v2350_v14, 2147483647 }
0x1760   :  { %v2353_v48 = vshra.s32 %v2351_v40, 16  ;;  %v2352_v49 = vand.u32 65535, %v2351_v40 }
0x1762   :  { %v2355_v52 = vcvt.s32.f32 %v2353_v48  ;;  %v2354_v42 = vcvt.s32.f32 %v2352_v49 }
0x1764   :  { %2356 = vmin.xlane.f32.xlu1 %v2355_v52 }
0x17ed   :  { %v2357_v1 = vpop.xlane.xlu1 %2356 }
0x17ee   :  { %vm2358_vm1 = vcmp.eq.f32.partialorder %v2355_v52, %v2357_v1  ;;  %v2363_v28 = vcvt.f32.s32 %v2357_v1 }
0x17ef   :  { %v2359_v8 = vsel %vm2358_vm1, %v2354_v42, inf }
0x17f0   :  { %2360 = vmin.xlane.f32.xlu0 %v2359_v8  ;;  %v2364_v9 = vshll.u32 %v2363_v28, 16 }
0x1879   :  { %v2361_v20 = vpop.xlane.xlu0 %2360 }
0x187a   :  { %v2362_v50 = vcvt.f32.s32 %v2361_v20 }
0x187c   :  { %v2365_v51 = vadd.s32 %v2364_v9, %v2362_v50 }
0x187e   :  { %2366 = vst.msk [vmem:[%s3706_s16] sm:$0xff] %vm2021_vm5, %v2365_v51 }

</bundles_post_ra>
